<compile_context>
chip_gen: v6e
topology: v6e:2x2x1
jax: 0.10.0
libtpu: 0.0.40
codegen_flags: <defaults>
</compile_context>

<pallas_src>
import functools

import jax
import jax.numpy as jnp
import numpy as np
from jax import lax
from jax.experimental import pallas as pl
from jax.experimental.pallas import tpu as pltpu


# ----------------------------------------------------------------------------
# Pallas kernel: positional add + attention layer + residual FFN + classifier
# FFN + log-softmax for a chunk of `n_seq` independent sequences.
# ----------------------------------------------------------------------------
def transformer_kernel(emb_ref, sinu_ref, wa_ref, wb_ref, bias_ref,
                       logp_ref, attn_ref, *,
                       n_seq, seq_len, d_model, d_internal, num_classes):
    di, dm, nc = d_internal, d_model, num_classes
    m = n_seq * seq_len                                   # rows per grid step

    # x = embed(indices) + sinusoidal positional encoding (sinu pre-tiled)
    x = emb_ref[...] + sinu_ref[...]                      # [m, dm]

    # --- fused Q|K|V projection (single MXU push; attention scale
    #     1/sqrt(d_model) already folded into the Q columns) ---
    qkv = jnp.dot(x, wa_ref[:, :2 * di + dm],
                  preferred_element_type=jnp.float32)     # [m, 2*di + dm]
    q = qkv[:, :di].reshape(n_seq, seq_len, di)
    k = qkv[:, di:2 * di].reshape(n_seq, seq_len, di)
    v = qkv[:, 2 * di:2 * di + dm].reshape(n_seq, seq_len, dm)

    # per-sequence scores: contract the feature dim of both operands directly
    # (avoids materializing K^T)
    s = lax.dot_general(q, k, (((2,), (2,)), ((0,), (0,))),
                        preferred_element_type=jnp.float32)   # [n_seq, T, T]

    # softmax over the last dim; reciprocal on the EUP (approx) + one Newton
    # refinement step keeps full f32 accuracy without a VALU divide.
    s_max = jnp.max(s, axis=-1, keepdims=True)
    p = jnp.exp(s - s_max)
    denom = jnp.sum(p, axis=-1, keepdims=True)
    r = pl.reciprocal(denom, approx=True)
    r = r * (2.0 - denom * r)
    attn = p * r
    attn_ref[...] = attn

    a = lax.dot_general(attn, v, (((2,), (1,)), ((0,), (0,))),
                        preferred_element_type=jnp.float32)   # [n_seq, T, dm]
    a = a.reshape(m, dm) + x                                  # residual

    # static lane-slices of the packed weight / bias refs (zero-cost views)
    w1 = wa_ref[:, 2 * di + dm:3 * di + dm]
    f1 = wa_ref[:, 3 * di + dm:4 * di + dm]
    w2 = wb_ref[:, :dm]
    f2 = wb_ref[:, dm:dm + nc]
    b1 = bias_ref[:, :di]
    b2 = bias_ref[:, di:di + dm]
    c1 = bias_ref[:, di + dm:2 * di + dm]
    c2 = bias_ref[:, 2 * di + dm:2 * di + dm + nc]

    # transformer-layer FFN (Linear -> ReLU -> [Dropout=id] -> Linear) + residual
    h = jnp.maximum(jnp.dot(a, w1, preferred_element_type=jnp.float32) + b1, 0.0)
    t_out = jnp.dot(h, w2, preferred_element_type=jnp.float32) + b2 + a

    # classifier FFN
    h2 = jnp.maximum(jnp.dot(t_out, f1, preferred_element_type=jnp.float32) + c1, 0.0)
    logits = jnp.dot(h2, f2, preferred_element_type=jnp.float32) + c2

    # LogSoftmax(dim=-1)
    lmax = jnp.max(logits, axis=-1, keepdims=True)
    lse = lmax + jnp.log(jnp.sum(jnp.exp(logits - lmax), axis=-1, keepdims=True))
    logp_ref[...] = logits - lse


# ----------------------------------------------------------------------------
# Wrapper: pack parameters, build grid over batch chunks, call pallas_call.
# ----------------------------------------------------------------------------
@functools.partial(jax.jit, static_argnames=("chunk",))
def run_transformer(emb, sinu, params, *, chunk=16):
    """emb: [B, T, d_model] f32 (embedding gather done outside);
       sinu: [T, d_model] f32; params: dict of [in, out] weights."""
    B, T, d_model = emb.shape
    d_internal = params["WQ"].shape[1]
    num_classes = params["F2"].shape[1]
    assert B % chunk == 0, "batch must be a multiple of the per-step chunk"
    n_chunks = B // chunk
    M = chunk * T                                     # rows per grid step (=128)

    # Pack weights -> 2 arrays, biases -> 1 array (fewer tiny DMAs).  The
    # attention scale 1/sqrt(d_model) is folded into the Q projection.
    scale = np.float32(1.0 / np.sqrt(d_model))
    wa = jnp.concatenate([params["WQ"] * scale, params["WK"], params["WV"],
                          params["W1"], params["F1"]], axis=1)    # [dm, 4*di+dm]
    wb = jnp.concatenate([params["W2"], params["F2"]], axis=1)    # [di, dm+nc]
    bias = jnp.concatenate([params["b1"], params["b2"],
                            params["c1"], params["c2"]], axis=1)  # [1, 2*di+dm+nc]

    emb_flat = emb.reshape(B * T, d_model)
    sinu_tiled = jnp.tile(sinu, (chunk, 1))                       # [M, d_model]

    kernel = functools.partial(
        transformer_kernel, n_seq=chunk, seq_len=T, d_model=d_model,
        d_internal=d_internal, num_classes=num_classes)

    logp_flat, attn = pl.pallas_call(
        kernel,
        grid=(n_chunks,),
        out_shape=(
            jax.ShapeDtypeStruct((B * T, num_classes), jnp.float32),
            jax.ShapeDtypeStruct((B, T, T), jnp.float32),
        ),
        in_specs=[
            pl.BlockSpec((M, d_model), lambda i: (i, 0)),          # activations
            pl.BlockSpec((M, d_model), lambda i: (0, 0)),          # pos. encoding
            pl.BlockSpec(wa.shape, lambda i: (0, 0)),              # packed weights A
            pl.BlockSpec(wb.shape, lambda i: (0, 0)),              # packed weights B
            pl.BlockSpec(bias.shape, lambda i: (0, 0)),            # packed biases
        ],
        out_specs=(
            pl.BlockSpec((M, num_classes), lambda i: (i, 0)),
            pl.BlockSpec((chunk, T, T), lambda i: (i, 0, 0)),
        ),
        compiler_params=pltpu.CompilerParams(
            dimension_semantics=("parallel",)),    # shard chunks across TCs (v7x)
    )(emb_flat, sinu_tiled, wa, wb, bias)

    return logp_flat.reshape(B, T, num_classes), attn


# ----------------------------------------------------------------------------
# Pure-JAX reference for correctness checking (uses the unpacked, unscaled
# parameters, i.e. the literal module math).
# ----------------------------------------------------------------------------
def reference_forward(emb, sinu, params):
    x = emb + sinu[None]                                  # [B, T, dm]
    d_model = x.shape[-1]
    q = x @ params["WQ"]
    k = x @ params["WK"]
    v = x @ params["WV"]
    s = jnp.einsum("btd,bsd->bts", q, k) / jnp.sqrt(jnp.float32(d_model))
    attn = jax.nn.softmax(s, axis=-1)
    a = jnp.einsum("bts,bsd->btd", attn, v) + x
    h = jax.nn.relu(a @ params["W1"] + params["b1"])
    t_out = h @ params["W2"] + params["b2"] + a
    h2 = jax.nn.relu(t_out @ params["F1"] + params["c1"])
    logits = h2 @ params["F2"] + params["c2"]
    return jax.nn.log_softmax(logits, axis=-1), attn


# ----------------------------------------------------------------------------
# Deterministic parameter / input construction.
# ----------------------------------------------------------------------------
def make_sinu(num_positions, d_model):
    # Exactly reproduces the PositionalEncoding.__init__ loop (uses 2*m, not
    # 2*(m//2), as in the reference code).
    pos = np.arange(num_positions, dtype=np.float32)[:, None]
    m = np.arange(d_model, dtype=np.float32)[None, :]
    angle = pos / np.power(10000.0, 2.0 * m / d_model)
    sinu = np.where((np.arange(d_model) % 2 == 0)[None, :],
                    np.sin(angle), np.cos(angle))
    return jnp.asarray(sinu, dtype=jnp.float32)


def init_params(key, vocab_size, d_model, d_internal, num_classes):
    keys = jax.random.split(key, 12)

    def lin(k, fan_in, fan_out):
        bound = 1.0 / np.sqrt(fan_in)
        return jax.random.uniform(k, (fan_in, fan_out), jnp.float32, -bound, bound)

    def bias(k, fan_in, fan_out):
        bound = 1.0 / np.sqrt(fan_in)
        return jax.random.uniform(k, (1, fan_out), jnp.float32, -bound, bound)

    params = {
        # attention projections (no bias), stored as [in, out]
        "WQ": lin(keys[0], d_model, d_internal),
        "WK": lin(keys[1], d_model, d_internal),
        "WV": lin(keys[2], d_model, d_model),
        # layer FFN
        "W1": lin(keys[3], d_model, d_internal),
        "b1": bias(keys[4], d_model, d_internal),
        "W2": lin(keys[5], d_internal, d_model),
        "b2": bias(keys[6], d_internal, d_model),
        # classifier FFN
        "F1": lin(keys[7], d_model, d_internal),
        "c1": bias(keys[8], d_model, d_internal),
        "F2": lin(keys[9], d_internal, num_classes),
        "c2": bias(keys[10], d_internal, num_classes),
    }
    embed_table = jax.random.normal(keys[11], (vocab_size, d_model), jnp.float32)
    return params, embed_table


if __name__ == "__main__":
    vocab_size = 20
    num_positions = 8      # sequence length == num_positions (unbatched PE add)
    d_model = 32
    d_internal = 16
    num_classes = 8
    batch = 32             # independent sequences (== 32 module forward calls)
    chunk = 16             # sequences per grid step -> M = chunk*T = 128 rows

    key = jax.random.PRNGKey(0)
    k_param, k_idx = jax.random.split(key)
    params, embed_table = init_params(k_param, vocab_size, d_model,
                                      d_internal, num_classes)

    indices = jax.random.randint(k_idx, (batch, num_positions), 0, vocab_size)

    # Glue (outside kernel): embedding gather + sinusoidal table construction.
    emb = embed_table[indices]                      # [B, T, d_model]
    sinu = make_sinu(num_positions, d_model)        # [T, d_model]

    logp, attn = run_transformer(emb, sinu, params, chunk=chunk)
    logp = jax.block_until_ready(logp)
    attn = jax.block_until_ready(attn)

    # Correctness check against pure-JAX reference (slightly looser than 1e-5
    # to accommodate the EUP approx-reciprocal + Newton-step softmax path).
    ref_logp, ref_attn = reference_forward(emb, sinu, params)
    np.testing.assert_allclose(np.asarray(logp), np.asarray(ref_logp),
                               rtol=1e-4, atol=1e-4)
    np.testing.assert_allclose(np.asarray(attn), np.asarray(ref_attn),
                               rtol=1e-4, atol=1e-4)

    print("KERNEL_OK")
</pallas_src>

<mosaic_0001>
module attributes {stable_mosaic.version = 11 : i64} {
  func.func @transformer_kernel(%arg0: i32, %arg1: memref<128x32xf32, #tpu.memory_space<vmem>>, %arg2: memref<128x32xf32, #tpu.memory_space<vmem>>, %arg3: memref<32x96xf32, #tpu.memory_space<vmem>>, %arg4: memref<16x40xf32, #tpu.memory_space<vmem>>, %arg5: memref<1x72xf32, #tpu.memory_space<vmem>>, %arg6: memref<128x8xf32, #tpu.memory_space<vmem>>, %arg7: memref<16x8x8xf32, #tpu.memory_space<vmem>>) attributes {dimension_semantics = [#tpu.dimension_semantics<parallel>], iteration_bounds = array<i64: 2>, scalar_prefetch = 0 : i64, scratch_operands = 0 : i64, tpu.core_type = #tpu.core_type<tc>, window_params = [{transform_indices = @transform_0, window_bounds = array<i64: 128, 32>}, {pipeline_mode = #tpu.pipeline_mode<synchronous>, transform_indices = @transform_1, window_bounds = array<i64: 128, 32>}, {pipeline_mode = #tpu.pipeline_mode<synchronous>, transform_indices = @transform_2, window_bounds = array<i64: 32, 96>}, {pipeline_mode = #tpu.pipeline_mode<synchronous>, transform_indices = @transform_3, window_bounds = array<i64: 16, 40>}, {pipeline_mode = #tpu.pipeline_mode<synchronous>, transform_indices = @transform_4, window_bounds = array<i64: 1, 72>}, {transform_indices = @transform_5, window_bounds = array<i64: 128, 8>}, {transform_indices = @transform_6, window_bounds = array<i64: 16, 8, 8>}]} {
    %c0 = arith.constant 0 : index
    %c0_0 = arith.constant 0 : index
    %0 = vector.load %arg1[%c0, %c0_0] : memref<128x32xf32, #tpu.memory_space<vmem>>, vector<128x32xf32>
    %c0_1 = arith.constant 0 : index
    %c0_2 = arith.constant 0 : index
    %1 = vector.load %arg2[%c0_1, %c0_2] : memref<128x32xf32, #tpu.memory_space<vmem>>, vector<128x32xf32>
    %2 = arith.addf %0, %1 : vector<128x32xf32>
    %c0_3 = arith.constant 0 : index
    %c0_4 = arith.constant 0 : index
    %3 = vector.load %arg3[%c0_3, %c0_4] : memref<32x96xf32, #tpu.memory_space<vmem>>, vector<32x64xf32>
    %cst = arith.constant dense<0.000000e+00> : vector<128x64xf32>
    %4 = tpu.matmul %2, %3, %cst {dimension_numbers = #tpu.dot_dimension_numbers<[1], [0], [0], [1], [0, 0, 1, 1], [], []>} : vector<128x32xf32>, vector<32x64xf32>, vector<128x64xf32> -> vector<128x64xf32>
    %5 = vector.extract_strided_slice %4 {offsets = [0, 0], sizes = [128, 16], strides = [1, 1]} : vector<128x64xf32> to vector<128x16xf32>
    %6 = vector.shape_cast %5 : vector<128x16xf32> to vector<16x8x16xf32>
    %7 = vector.extract_strided_slice %4 {offsets = [0, 16], sizes = [128, 16], strides = [1, 1]} : vector<128x64xf32> to vector<128x16xf32>
    %8 = vector.shape_cast %7 : vector<128x16xf32> to vector<16x8x16xf32>
    %9 = vector.extract_strided_slice %4 {offsets = [0, 32], sizes = [128, 32], strides = [1, 1]} : vector<128x64xf32> to vector<128x32xf32>
    %10 = vector.shape_cast %9 : vector<128x32xf32> to vector<16x8x32xf32>
    %cst_5 = arith.constant dense<0.000000e+00> : vector<16x8x8xf32>
    %11 = tpu.matmul %6, %8, %cst_5 {dimension_numbers = #tpu.dot_dimension_numbers<[2], [2], [1], [1], [0, 0, 0, 1, 1, 1], [0], [0]>} : vector<16x8x16xf32>, vector<16x8x16xf32>, vector<16x8x8xf32> -> vector<16x8x8xf32>
    %cst_6 = arith.constant dense<0xFF800000> : vector<16x8xf32>
    %12 = vector.multi_reduction <maximumf>, %11, %cst_6 [2] : vector<16x8x8xf32> to vector<16x8xf32>
    %13 = vector.shape_cast %12 : vector<16x8xf32> to vector<16x8x1xf32>
    %14 = vector.broadcast %13 : vector<16x8x1xf32> to vector<16x8x8xf32>
    %15 = arith.subf %11, %14 : vector<16x8x8xf32>
    %16 = math.exp %15 : vector<16x8x8xf32>
    %cst_7 = arith.constant dense<0.000000e+00> : vector<16x8xf32>
    %17 = vector.multi_reduction <add>, %16, %cst_7 [2] : vector<16x8x8xf32> to vector<16x8xf32>
    %18 = vector.shape_cast %17 : vector<16x8xf32> to vector<16x8x1xf32>
    %19 = tpu.reciprocal %18 {approx = true} : vector<16x8x1xf32> -> vector<16x8x1xf32>
    %20 = arith.mulf %18, %19 : vector<16x8x1xf32>
    %cst_8 = arith.constant 2.000000e+00 : f32
    %21 = vector.broadcast %cst_8 : f32 to vector<16x8x1xf32>
    %22 = arith.subf %21, %20 : vector<16x8x1xf32>
    %23 = arith.mulf %19, %22 : vector<16x8x1xf32>
    %24 = vector.broadcast %23 : vector<16x8x1xf32> to vector<16x8x8xf32>
    %25 = arith.mulf %16, %24 : vector<16x8x8xf32>
    %c0_9 = arith.constant 0 : index
    %c0_10 = arith.constant 0 : index
    %c0_11 = arith.constant 0 : index
    %26 = vector.load %arg7[%c0_9, %c0_10, %c0_11] : memref<16x8x8xf32, #tpu.memory_space<vmem>>, vector<16x8x8xf32>
    tpu.vector_store %arg7[%c0_9, %c0_10, %c0_11], %25 {strides = array<i32>} : memref<16x8x8xf32, #tpu.memory_space<vmem>>, vector<16x8x8xf32>,
    %cst_12 = arith.constant dense<0.000000e+00> : vector<16x8x32xf32>
    %27 = tpu.matmul %25, %10, %cst_12 {dimension_numbers = #tpu.dot_dimension_numbers<[2], [1], [1], [2], [0, 0, 0, 1, 1, 2], [0], [0]>} : vector<16x8x8xf32>, vector<16x8x32xf32>, vector<16x8x32xf32> -> vector<16x8x32xf32>
    %28 = vector.shape_cast %27 : vector<16x8x32xf32> to vector<128x32xf32>
    %29 = arith.addf %28, %2 : vector<128x32xf32>
    %c0_13 = arith.constant 0 : index
    %c64 = arith.constant 64 : index
    %30 = vector.load %arg3[%c0_13, %c64] : memref<32x96xf32, #tpu.memory_space<vmem>>, vector<32x16xf32>
    %c0_14 = arith.constant 0 : index
    %c80 = arith.constant 80 : index
    %31 = vector.load %arg3[%c0_14, %c80] : memref<32x96xf32, #tpu.memory_space<vmem>>, vector<32x16xf32>
    %c0_15 = arith.constant 0 : index
    %c0_16 = arith.constant 0 : index
    %32 = vector.load %arg4[%c0_15, %c0_16] : memref<16x40xf32, #tpu.memory_space<vmem>>, vector<16x32xf32>
    %c0_17 = arith.constant 0 : index
    %c32 = arith.constant 32 : index
    %33 = vector.load %arg4[%c0_17, %c32] : memref<16x40xf32, #tpu.memory_space<vmem>>, vector<16x8xf32>
    %c0_18 = arith.constant 0 : index
    %c0_19 = arith.constant 0 : index
    %34 = vector.load %arg5[%c0_18, %c0_19] : memref<1x72xf32, #tpu.memory_space<vmem>>, vector<1x16xf32>
    %c0_20 = arith.constant 0 : index
    %c16 = arith.constant 16 : index
    %35 = vector.load %arg5[%c0_20, %c16] : memref<1x72xf32, #tpu.memory_space<vmem>>, vector<1x32xf32>
    %c0_21 = arith.constant 0 : index
    %c48 = arith.constant 48 : index
    %36 = vector.load %arg5[%c0_21, %c48] : memref<1x72xf32, #tpu.memory_space<vmem>>, vector<1x16xf32>
    %c0_22 = arith.constant 0 : index
    %c64_23 = arith.constant 64 : index
    %37 = vector.load %arg5[%c0_22, %c64_23] : memref<1x72xf32, #tpu.memory_space<vmem>>, vector<1x8xf32>
    %cst_24 = arith.constant dense<0.000000e+00> : vector<128x16xf32>
    %38 = tpu.matmul %29, %30, %cst_24 {dimension_numbers = #tpu.dot_dimension_numbers<[1], [0], [0], [1], [0, 0, 1, 1], [], []>} : vector<128x32xf32>, vector<32x16xf32>, vector<128x16xf32> -> vector<128x16xf32>
    %39 = vector.broadcast %34 : vector<1x16xf32> to vector<128x16xf32>
    %40 = arith.addf %38, %39 : vector<128x16xf32>
    %cst_25 = arith.constant 0.000000e+00 : f32
    %41 = vector.broadcast %cst_25 : f32 to vector<128x16xf32>
    %42 = arith.maximumf %40, %41 : vector<128x16xf32>
    %cst_26 = arith.constant dense<0.000000e+00> : vector<128x32xf32>
    %43 = tpu.matmul %42, %32, %cst_26 {dimension_numbers = #tpu.dot_dimension_numbers<[1], [0], [0], [1], [0, 0, 1, 1], [], []>} : vector<128x16xf32>, vector<16x32xf32>, vector<128x32xf32> -> vector<128x32xf32>
    %44 = vector.broadcast %35 : vector<1x32xf32> to vector<128x32xf32>
    %45 = arith.addf %43, %44 : vector<128x32xf32>
    %46 = arith.addf %45, %29 : vector<128x32xf32>
    %cst_27 = arith.constant dense<0.000000e+00> : vector<128x16xf32>
    %47 = tpu.matmul %46, %31, %cst_27 {dimension_numbers = #tpu.dot_dimension_numbers<[1], [0], [0], [1], [0, 0, 1, 1], [], []>} : vector<128x32xf32>, vector<32x16xf32>, vector<128x16xf32> -> vector<128x16xf32>
    %48 = vector.broadcast %36 : vector<1x16xf32> to vector<128x16xf32>
    %49 = arith.addf %47, %48 : vector<128x16xf32>
    %cst_28 = arith.constant 0.000000e+00 : f32
    %50 = vector.broadcast %cst_28 : f32 to vector<128x16xf32>
    %51 = arith.maximumf %49, %50 : vector<128x16xf32>
    %cst_29 = arith.constant dense<0.000000e+00> : vector<128x8xf32>
    %52 = tpu.matmul %51, %33, %cst_29 {dimension_numbers = #tpu.dot_dimension_numbers<[1], [0], [0], [1], [0, 0, 1, 1], [], []>} : vector<128x16xf32>, vector<16x8xf32>, vector<128x8xf32> -> vector<128x8xf32>
    %53 = vector.broadcast %37 : vector<1x8xf32> to vector<128x8xf32>
    %54 = arith.addf %52, %53 : vector<128x8xf32>
    %cst_30 = arith.constant dense<0xFF800000> : vector<128xf32>
    %55 = vector.multi_reduction <maximumf>, %54, %cst_30 [1] : vector<128x8xf32> to vector<128xf32>
    %56 = vector.shape_cast %55 : vector<128xf32> to vector<128x1xf32>
    %57 = vector.broadcast %56 : vector<128x1xf32> to vector<128x8xf32>
    %58 = arith.subf %54, %57 : vector<128x8xf32>
    %59 = math.exp %58 : vector<128x8xf32>
    %cst_31 = arith.constant dense<0.000000e+00> : vector<128xf32>
    %60 = vector.multi_reduction <add>, %59, %cst_31 [1] : vector<128x8xf32> to vector<128xf32>
    %61 = vector.shape_cast %60 : vector<128xf32> to vector<128x1xf32>
    %62 = math.log %61 : vector<128x1xf32>
    %63 = arith.addf %56, %62 : vector<128x1xf32>
    %64 = vector.broadcast %63 : vector<128x1xf32> to vector<128x8xf32>
    %65 = arith.subf %54, %64 : vector<128x8xf32>
    %c0_32 = arith.constant 0 : index
    %c0_33 = arith.constant 0 : index
    %66 = vector.load %arg6[%c0_32, %c0_33] : memref<128x8xf32, #tpu.memory_space<vmem>>, vector<128x8xf32>
    tpu.vector_store %arg6[%c0_32, %c0_33], %65 {strides = array<i32>} : memref<128x8xf32, #tpu.memory_space<vmem>>, vector<128x8xf32>,
    return
  }
  func.func @transform_0(%arg0: i32) -> (i32, i32) {
    %c0_i32 = arith.constant 0 : i32
    %c0_i32_0 = arith.constant 0 : i32
    return %arg0, %c0_i32 : i32, i32
  }
  func.func @transform_1(%arg0: i32) -> (i32, i32) {
    %c0_i32 = arith.constant 0 : i32
    %c0_i32_0 = arith.constant 0 : i32
    %c0_i32_1 = arith.constant 0 : i32
    return %c0_i32, %c0_i32_0 : i32, i32
  }
  func.func @transform_2(%arg0: i32) -> (i32, i32) {
    %c0_i32 = arith.constant 0 : i32
    %c0_i32_0 = arith.constant 0 : i32
    %c0_i32_1 = arith.constant 0 : i32
    return %c0_i32, %c0_i32_0 : i32, i32
  }
  func.func @transform_3(%arg0: i32) -> (i32, i32) {
    %c0_i32 = arith.constant 0 : i32
    %c0_i32_0 = arith.constant 0 : i32
    %c0_i32_1 = arith.constant 0 : i32
    return %c0_i32, %c0_i32_0 : i32, i32
  }
  func.func @transform_4(%arg0: i32) -> (i32, i32) {
    %c0_i32 = arith.constant 0 : i32
    %c0_i32_0 = arith.constant 0 : i32
    %c0_i32_1 = arith.constant 0 : i32
    return %c0_i32, %c0_i32_0 : i32, i32
  }
  func.func @transform_5(%arg0: i32) -> (i32, i32) {
    %c0_i32 = arith.constant 0 : i32
    %c0_i32_0 = arith.constant 0 : i32
    return %arg0, %c0_i32 : i32, i32
  }
  func.func @transform_6(%arg0: i32) -> (i32, i32, i32) {
    %c0_i32 = arith.constant 0 : i32
    %c0_i32_0 = arith.constant 0 : i32
    %c0_i32_1 = arith.constant 0 : i32
    return %arg0, %c0_i32, %c0_i32_0 : i32, i32, i32
  }
}

</mosaic_0001>

<bundles_post_ra>
// kernel: run_transformer.1
= control target key start
LH: loop header
LB: loop body
LE: loop exit
PB: predicated region body
PF: predicated region fallthrough
CT: control target
= control target key end

     0   :  { %s5220_s21 = smov 0   ;;  %s6304_s0 = inlined_call_operand.vmem [shape: f32[256,32], index: 0, kind: input, shape index: {}]   ;;  %s6305_s1 = inlined_call_operand.vmem [shape: f32[128,32], index: 1, kind: input, shape index: {}]   ;;  %s6306_s2 = inlined_call_operand.vmem [shape: f32[32,96], index: 2, kind: input, shape index: {}]   ;;  %s6307_s3 = inlined_call_operand.vmem [shape: f32[16,40], index: 3, kind: input, shape index: {}]   ;;  %s6308_s4 = inlined_call_operand.vmem [shape: f32[1,72], index: 4, kind: input, shape index: {}]   ;;  %s6309_s5 = inlined_call_operand.vmem [shape: f32[256,8], index: 5, kind: output, shape index: {0}]   ;;  %s6310_s6 = inlined_call_operand.vmem [shape: f32[32,8,8], index: 6, kind: output, shape index: {1}]  }
   0x1 LB: > { %s4413_s22 = sadd.s32 4294967295, %s5176_s21   ;;  %p4417_p0 = scmp.ge.s32.totalorder %s5176_s21, 1  ;;  %s5176_s21 = sphi %s5220_s21, %s17_s21  }
   0x2   : > { %p216_p1 = scmp.lt.s32.totalorder %s5176_s21, 3 }
   0x4   : > { %p217_p2 = pnand %p4417_p0, %p216_p1 }
   0x5   : > { %s4418_s27 = sshll.u32 (!%p217_p2), %s4413_s22, 4  ;;  %s5181_s24 = smov (!%p217_p2), 96  }
   0x6   : > { %220 = sbr.rel (%p217_p2) target bundleno = 2259 (0x8d3), region = 40  ;;  %p252_p3 = scmp.lt.s32.totalorder (!%p217_p2), %s4418_s27, 31 }
   0x7   : > { %s5183_s19 = smov (!%p217_p2), 48   ;;  %s5184_s23 = smov (!%p217_p2), 80  }
   0xb   : > { %v320_v0 = vld [vmem:[%s6306_s2 + $0x18] sm:$0xff]  ;;  %v319_v1 = vld [vmem:[%s6306_s2 + $0x10] sm:$0xff]  ;;  %v318_v2 = vld [vmem:[%s6306_s2 + $0x8] sm:$0xff]  ;;  %s6312_s27 = smov (!%p252_p3, %s4418_s27), 31  ;;  %vm321_vm0 = vcmask 261120   ;;  %v5178_v52 = vmov 0.0  }
   0xc   : > { %4715 = vmatprep.subr.mxu0 %v320_v0  ;;  %v317_v3 = vld [vmem:[%s6306_s2] sm:$0xff]  ;;  %s5240_s8 = sshll.u32 %s6312_s27, 3  ;;  %v286_v5 = vld [vmem:[%s6305_s1 + $0x8] sm:$0xff]  ;;  %v287_v6 = vld [vmem:[%s6305_s1 + $0x10] sm:$0xff]  ;;  %4747 = vmatprep.subr.mxu1 %v5178_v52  ;;  %vm5179_vm1 = vmmov 0   ;;  %vm518_vm2 = vcmask 130048  }
   0xd   : > { %4716 = vmatpush3.msra.mxu0 %v320_v0  ;;  %v285_v4 = vld [vmem:[%s6305_s1] sm:$0xff]  ;;  %s5255_s17 = scalar_lea.vmem %s6304_s0, %s5240_s8  ;;  %v288_v14 = vld [vmem:[%s6305_s1 + $0x18] sm:$0xff]  ;;  %v290_v20 = vld [vmem:[%s6305_s1 + $0x28] sm:$0xff]  ;;  %4749 = vmatprep.mubr.msk.f32.mxu1 %vm5179_vm1, %v5178_v52  ;;  %vm1748_vm3 = vcmask 64512   ;;  %s5182_s27 = smov 64  }
   0xe   : > { %4717 = vmatprep.subr.mxu0 %v319_v1  ;;  %v269_v7 = vld [vmem:[%s5255_s17] sm:$0xff]  ;;  %v270_v8 = vld [vmem:[%s5255_s17 + $0x8] sm:$0xff]  ;;  %v271_v9 = vld [vmem:[%s5255_s17 + $0x10] sm:$0xff]  ;;  %s5756_s13 = scalar_lea.vmem %s6310_s6, %s5240_s8  ;;  %s6236_s25 = scalar_lea.vmem %s6309_s5, %s5240_s8 }
   0xf   : > { %4718 = vmatpush3.msra.mxu0 %v319_v1  ;;  %v5260_v10 = vadd.f32 %v285_v4, %v269_v7  ;;  %v5262_v11 = vadd.f32 %v286_v5, %v270_v8  ;;  %v5264_v12 = vadd.f32 %v287_v6, %v271_v9  ;;  %v272_v13 = vld [vmem:[%s5255_s17 + $0x18] sm:$0xff]  ;;  %v273_v15 = vld [vmem:[%s5255_s17 + $0x20] sm:$0xff]  ;;  %v274_v19 = vld [vmem:[%s5255_s17 + $0x28] sm:$0xff] }
  0x10   : > { %4719 = vmatprep.subr.mxu0 %v318_v2  ;;  %v289_v16 = vld [vmem:[%s6305_s1 + $0x20] sm:$0xff]  ;;  %v5278_v17 = vadd.f32 %v288_v14, %v272_v13  ;;  %v275_v21 = vld [vmem:[%s5255_s17 + $0x30] sm:$0xff]  ;;  %v5294_v23 = vadd.f32 %v290_v20, %v274_v19  ;;  %v276_v25 = vld [vmem:[%s5255_s17 + $0x38] sm:$0xff] }
  0x11   : > { %4720 = vmatpush3.msra.mxu0 %v318_v2  ;;  %4723 = vmatprep.mubr.msk.f32.mxu0 %vm321_vm0, %v5260_v10  ;;  %v5282_v18 = vadd.f32 %v289_v16, %v273_v15  ;;  %v291_v22 = vld [vmem:[%s6305_s1 + $0x30] sm:$0xff]  ;;  %v292_v26 = vld [vmem:[%s6305_s1 + $0x38] sm:$0xff]  ;;  %v277_v27 = vld [vmem:[%s5255_s17 + $0x40] sm:$0xff] }
  0x12   : > { %4721 = vmatprep.subr.mxu0 %v317_v3  ;;  %v5298_v24 = vadd.f32 %v291_v22, %v275_v21  ;;  %v293_v28 = vld [vmem:[%s6305_s1 + $0x40] sm:$0xff]  ;;  %v5310_v29 = vadd.f32 %v292_v26, %v276_v25  ;;  %v278_v31 = vld [vmem:[%s5255_s17 + $0x48] sm:$0xff]  ;;  %v279_v33 = vld [vmem:[%s5255_s17 + $0x50] sm:$0xff] }
  0x13   : > { %4722 = vmatpush3.msra.mxu0 %v317_v3  ;;  %v5314_v30 = vadd.f32 %v293_v28, %v277_v27  ;;  %v294_v32 = vld [vmem:[%s6305_s1 + $0x48] sm:$0xff]  ;;  %v295_v34 = vld [vmem:[%s6305_s1 + $0x50] sm:$0xff]  ;;  %v280_v37 = vld [vmem:[%s5255_s17 + $0x58] sm:$0xff] }
  0x14   : > { %4724 = vmatmul.mubr.msk.f32.vlgmr.msra.gmra.mxu0 %vm321_vm0, %v5262_v11  ;;  %v5326_v35 = vadd.f32 %v294_v32, %v278_v31  ;;  %v5330_v36 = vadd.f32 %v295_v34, %v279_v33  ;;  %v296_v38 = vld [vmem:[%s6305_s1 + $0x58] sm:$0xff]  ;;  %v281_v39 = vld [vmem:[%s5255_s17 + $0x60] sm:$0xff]  ;;  %v282_v43 = vld [vmem:[%s5255_s17 + $0x68] sm:$0xff]  ;;  %4792 = vmatprep.subr.mxu0 %v5178_v52 }
  0x15   : > { %4726 = vmatprep.mubr.msk.f32.mxu0 %vm321_vm0, %v5264_v12  ;;  %v297_v40 = vld [vmem:[%s6305_s1 + $0x60] sm:$0xff]  ;;  %v5342_v41 = vadd.f32 %v296_v38, %v280_v37  ;;  %v298_v44 = vld [vmem:[%s6305_s1 + $0x68] sm:$0xff]  ;;  %v283_v45 = vld [vmem:[%s5255_s17 + $0x70] sm:$0xff] }
  0x16   : > { %v5346_v42 = vadd.f32 %v297_v40, %v281_v39  ;;  %v299_v46 = vld [vmem:[%s6305_s1 + $0x70] sm:$0xff]  ;;  %v5358_v47 = vadd.f32 %v298_v44, %v282_v43  ;;  %v284_v49 = vld [vmem:[%s5255_s17 + $0x78] sm:$0xff]  ;;  %s5180_s17 = smov 112  }
  0x17   : > { %v5362_v48 = vadd.f32 %v299_v46, %v283_v45  ;;  %v300_v50 = vld [vmem:[%s6305_s1 + $0x78] sm:$0xff] }
  0x18   : > { %4727 = vmatmul.mubr.msk.f32.gmra.mxu0 %vm321_vm0, %v5278_v17  ;;  %v5370_v51 = vadd.f32 %v300_v50, %v284_v49 }
  0x19   : > { %4729 = vmatprep.mubr.msk.f32.mxu0 %vm321_vm0, %v5282_v18 }
  0x1c   : > { %4730 = vmatmul.mubr.msk.f32.gmra.mxu0 %vm321_vm0, %v5294_v23 }
  0x1d   : > { %4732 = vmatprep.mubr.msk.f32.mxu0 %vm321_vm0, %v5298_v24 }
  0x20   : > { %4733 = vmatmul.mubr.msk.f32.gmra.mxu0 %vm321_vm0, %v5310_v29 }
  0x21   : > { %4735 = vmatprep.mubr.msk.f32.mxu0 %vm321_vm0, %v5314_v30 }
  0x24   : > { %4736 = vmatmul.mubr.msk.f32.gmra.mxu0 %vm321_vm0, %v5326_v35 }
  0x25   : > { %4738 = vmatprep.mubr.msk.f32.mxu0 %vm321_vm0, %v5330_v36 }
  0x28   : > { %4739 = vmatmul.mubr.msk.f32.gmra.mxu0 %vm321_vm0, %v5342_v41 }
  0x29   : > { %4741 = vmatprep.mubr.msk.f32.mxu0 %vm321_vm0, %v5346_v42 }
  0x2c   : > { %4742 = vmatmul.mubr.msk.f32.gmra.mxu0 %vm321_vm0, %v5358_v47 }
  0x2d   : > { %4744 = vmatprep.mubr.msk.f32.mxu0 %vm321_vm0, %v5362_v48 }
  0x30   : > { %4745 = vmatmul.mubr.msk.f32.gmra.mxu0 %vm321_vm0, %v5370_v51 }
  0x31   : > { %4794 = vmatprep.mubr.msk.f32.mxu0 %vm5179_vm1, %v5178_v52 }
  0xd4   : > { %v5382_v53 = vpop.f32.mrf.mxu0 }
  0xd6   : > { %v5384_v54 = vpop.f32.mrf.mxu0 }
  0xd7   : > { %516 = vrot.lane.b32.xlu0 %v5384_v54, %s5180_s17 }
  0xd8   : > { %v5388_v55 = vpop.f32.mrf.mxu0 }
  0xda   : > { %v5390_v56 = vpop.f32.mrf.mxu0 }
  0xdb   : > { %594 = vrot.lane.b32.xlu0 %v5382_v53, %s5180_s17  ;;  %671 = vrot.lane.b32.xlu1 %v5390_v56, %s5180_s17 }
  0xdc   : > { %v5396_v57 = vpop.f32.mrf.mxu0 }
  0xde   : > { %v5398_v58 = vpop.f32.mrf.mxu0 }
  0xdf   : > { %748 = vrot.lane.b32.xlu1 %v5388_v55, %s5180_s17  ;;  %825 = vrot.lane.b32.xlu0 %v5398_v58, %s5180_s17 }
  0xe0   : > { %v5404_v59 = vpop.f32.mrf.mxu0 }
  0xe2   : > { %v5406_v60 = vpop.f32.mrf.mxu0 }
  0xe3   : > { %902 = vrot.lane.b32.xlu1 %v5396_v57, %s5180_s17  ;;  %979 = vrot.lane.b32.xlu0 %v5406_v60, %s5180_s17 }
  0xe4   : > { %v5412_v61 = vpop.f32.mrf.mxu0 }
  0xe6   : > { %v5414_v62 = vpop.f32.mrf.mxu0 }
  0xe7   : > { %1056 = vrot.lane.b32.xlu1 %v5404_v59, %s5180_s17  ;;  %1133 = vrot.lane.b32.xlu0 %v5414_v62, %s5180_s17 }
  0xe8   : > { %v5420_v63 = vpop.f32.mrf.mxu0 }
  0xea   : > { %v5422_v0 = vpop.f32.mrf.mxu0 }
  0xeb   : > { %1210 = vrot.lane.b32.xlu1 %v5412_v61, %s5180_s17  ;;  %1287 = vrot.lane.b32.xlu0 %v5422_v0, %s5180_s17 }
  0xec   : > { %v5428_v1 = vpop.f32.mrf.mxu0 }
  0xee   : > { %v5430_v2 = vpop.f32.mrf.mxu0 }
  0xef   : > { %1364 = vrot.lane.b32.xlu1 %v5420_v63, %s5180_s17  ;;  %1441 = vrot.lane.b32.xlu0 %v5430_v2, %s5180_s17 }
  0xf0   : > { %v5436_v3 = vpop.f32.mrf.mxu0 }
  0xf2   : > { %v5438_v4 = vpop.f32.mrf.mxu0 }
  0xf3   : > { %1518 = vrot.lane.b32.xlu1 %v5428_v1, %s5180_s17  ;;  %1595 = vrot.lane.b32.xlu0 %v5438_v4, %s5180_s17 }
  0xf7   : > { %1672 = vrot.lane.b32.xlu1 %v5436_v3, %s5180_s17 }
 0x149   : > { %v517_v5 = vpop.permute.xlu0 %516 }
 0x14a   : > { %4748 = vmatpush3.xpose.msk.msra.mxu1 %vm518_vm2, %v517_v5 }
 0x14b   : > { %4752 = vmatprep.subr.mxu1 %v5178_v52 }
 0x14d   : > { %4750 = vmatmul.mubr.msk.f32.vlgmr.msra.gmra.mxu1 %vm518_vm2, %v5384_v54  ;;  %v595_v6 = vpop.permute.xlu0 %594  ;;  %v672_v7 = vpop.permute.xlu1 %671 }
 0x14e   : > { %4753 = vmatpush3.xpose.msk.msra.mxu1 %vm518_vm2, %v595_v6  ;;  %4754 = vmatprep.mubr.msk.f32.mxu1 %vm5179_vm1, %v5178_v52 }
 0x14f   : > { %4757 = vmatprep.subr.mxu1 %v5178_v52 }
 0x151   : > { %4755 = vmatmul.mubr.msk.f32.vlgmr.msra.gmra.mxu1 %vm518_vm2, %v5382_v53  ;;  %v749_v8 = vpop.permute.xlu1 %748  ;;  %v826_v13 = vpop.permute.xlu0 %825 }
 0x152   : > { %4758 = vmatpush3.xpose.msk.msra.mxu1 %vm518_vm2, %v672_v7  ;;  %4759 = vmatprep.mubr.msk.f32.mxu1 %vm5179_vm1, %v5178_v52 }
 0x153   : > { %4762 = vmatprep.subr.mxu1 %v5178_v52 }
 0x155   : > { %4760 = vmatmul.mubr.msk.f32.vlgmr.msra.gmra.mxu1 %vm518_vm2, %v5390_v56  ;;  %v903_v9 = vpop.permute.xlu1 %902  ;;  %v980_v16 = vpop.permute.xlu0 %979 }
 0x156   : > { %4763 = vmatpush3.xpose.msk.msra.mxu1 %vm518_vm2, %v749_v8  ;;  %4764 = vmatprep.mubr.msk.f32.mxu1 %vm5179_vm1, %v5178_v52 }
 0x157   : > { %4767 = vmatprep.subr.mxu1 %v5178_v52 }
 0x159   : > { %4765 = vmatmul.mubr.msk.f32.vlgmr.msra.gmra.mxu1 %vm518_vm2, %v5388_v55  ;;  %v1057_v14 = vpop.permute.xlu1 %1056  ;;  %v1134_v20 = vpop.permute.xlu0 %1133 }
 0x15a   : > { %4768 = vmatpush3.xpose.msk.msra.mxu1 %vm518_vm2, %v826_v13  ;;  %4769 = vmatprep.mubr.msk.f32.mxu1 %vm5179_vm1, %v5178_v52 }
 0x15b   : > { %4772 = vmatprep.subr.mxu1 %v5178_v52 }
 0x15d   : > { %4770 = vmatmul.mubr.msk.f32.vlgmr.msra.gmra.mxu1 %vm518_vm2, %v5398_v58  ;;  %v1211_v15 = vpop.permute.xlu1 %1210  ;;  %v1288_v22 = vpop.permute.xlu0 %1287 }
 0x15e   : > { %4773 = vmatpush3.xpose.msk.msra.mxu1 %vm518_vm2, %v903_v9  ;;  %4793 = vmatpush3.xpose.msk.msra.mxu0 %vm518_vm2, %v1211_v15 }
 0x15f   : > { %4774 = vmatprep.mubr.msk.f32.mxu1 %vm5179_vm1, %v5178_v52  ;;  %4777 = vmatprep.subr.mxu1 %v5178_v52 }
 0x160   : > { %4802 = vmatprep.subr.mxu0 %v5178_v52 }
 0x161   : > { %4775 = vmatmul.mubr.msk.f32.vlgmr.msra.gmra.mxu1 %vm518_vm2, %v5396_v57  ;;  %4795 = vmatmul.mubr.msk.f32.vlgmr.msra.gmra.mxu0 %vm518_vm2, %v5412_v61  ;;  %v1365_v19 = vpop.permute.xlu1 %1364  ;;  %v1442_v26 = vpop.permute.xlu0 %1441 }
 0x162   : > { %4778 = vmatpush3.xpose.msk.msra.mxu1 %vm518_vm2, %v980_v16  ;;  %4803 = vmatpush3.xpose.msk.msra.mxu0 %vm518_vm2, %v1365_v19 }
 0x163   : > { %4779 = vmatprep.mubr.msk.f32.mxu1 %vm5179_vm1, %v5178_v52  ;;  %4804 = vmatprep.mubr.msk.f32.mxu0 %vm5179_vm1, %v5178_v52 }
 0x164   : > { %4782 = vmatprep.subr.mxu1 %v5178_v52  ;;  %4812 = vmatprep.subr.mxu0 %v5178_v52 }
 0x165   : > { %4780 = vmatmul.mubr.msk.f32.vlgmr.msra.gmra.mxu1 %vm518_vm2, %v5406_v60  ;;  %4805 = vmatmul.mubr.msk.f32.vlgmr.msra.gmra.mxu0 %vm518_vm2, %v5420_v63  ;;  %v1519_v21 = vpop.permute.xlu1 %1518  ;;  %v1596_v27 = vpop.permute.xlu0 %1595 }
 0x166   : > { %4783 = vmatpush3.xpose.msk.msra.mxu1 %vm518_vm2, %v1057_v14  ;;  %4813 = vmatpush3.xpose.msk.msra.mxu0 %vm518_vm2, %v1519_v21 }
 0x167   : > { %4784 = vmatprep.mubr.msk.f32.mxu1 %vm5179_vm1, %v5178_v52  ;;  %4814 = vmatprep.mubr.msk.f32.mxu0 %vm5179_vm1, %v5178_v52 }
 0x168   : > { %4787 = vmatprep.subr.mxu1 %v5178_v52  ;;  %4822 = vmatprep.subr.mxu0 %v5178_v52 }
 0x169   : > { %4785 = vmatmul.mubr.msk.f32.vlgmr.msra.gmra.mxu1 %vm518_vm2, %v5404_v59  ;;  %4815 = vmatmul.mubr.msk.f32.vlgmr.msra.gmra.mxu0 %vm518_vm2, %v5428_v1  ;;  %v1673_v25 = vpop.permute.xlu1 %1672 }
 0x16a   : > { %4788 = vmatpush3.xpose.msk.msra.mxu1 %vm518_vm2, %v1134_v20  ;;  %4823 = vmatpush3.xpose.msk.msra.mxu0 %vm518_vm2, %v1673_v25 }
 0x16b   : > { %4789 = vmatprep.mubr.msk.f32.mxu1 %vm5179_vm1, %v5178_v52  ;;  %4824 = vmatprep.mubr.msk.f32.mxu0 %vm5179_vm1, %v5178_v52 }
 0x16c   : > { %4797 = vmatprep.subr.mxu1 %v5178_v52  ;;  %4832 = vmatprep.subr.mxu0 %v5178_v52 }
 0x16d   : > { %4790 = vmatmul.mubr.msk.f32.vlgmr.msra.gmra.mxu1 %vm518_vm2, %v5414_v62  ;;  %4825 = vmatmul.mubr.msk.f32.vlgmr.msra.gmra.mxu0 %vm518_vm2, %v5436_v3 }
 0x16e   : > { %4798 = vmatpush3.xpose.msk.msra.mxu1 %vm518_vm2, %v1288_v22  ;;  %4799 = vmatprep.mubr.msk.f32.mxu1 %vm5179_vm1, %v5178_v52 }
 0x16f   : > { %4807 = vmatprep.subr.mxu1 %v5178_v52  ;;  %4834 = vmatprep.mubr.msk.f32.mxu0 %vm5179_vm1, %v5178_v52 }
 0x171   : > { %4800 = vmatmul.mubr.msk.f32.vlgmr.msra.gmra.mxu1 %vm518_vm2, %v5422_v0 }
 0x172   : > { %4808 = vmatpush3.xpose.msk.msra.mxu1 %vm518_vm2, %v1442_v26  ;;  %4809 = vmatprep.mubr.msk.f32.mxu1 %vm5179_vm1, %v5178_v52 }
 0x173   : > { %4817 = vmatprep.subr.mxu1 %v5178_v52 }
 0x175   : > { %4810 = vmatmul.mubr.msk.f32.vlgmr.msra.gmra.mxu1 %vm518_vm2, %v5430_v2 }
 0x176   : > { %4818 = vmatpush3.xpose.msk.msra.mxu1 %vm518_vm2, %v1596_v27  ;;  %4819 = vmatprep.mubr.msk.f32.mxu1 %vm5179_vm1, %v5178_v52 }
 0x177   : > { %4827 = vmatprep.subr.mxu1 %v5178_v52 }
 0x179   : > { %4820 = vmatmul.mubr.msk.f32.vlgmr.msra.gmra.mxu1 %vm518_vm2, %v5438_v4 }
 0x17a   : > { %4829 = vmatprep.mubr.msk.f32.mxu1 %vm5179_vm1, %v5178_v52 }
 0x20d   : > { %v5542_v28 = vpop.f32.mrf.mxu1 }
 0x20e   : > { %v1749_v31 = vsel %vm1748_vm3, %v5542_v28, -inf }
 0x20f   : > { %v4751_v32 = vpop.f32.mrf.mxu1  ;;  %1750 = vmax.xlane.f32.xlu0 %v1749_v31 }
 0x211   : > { %v5546_v33 = vpop.f32.mrf.mxu1 }
 0x212   : > { %v1752_v34 = vsel %vm1748_vm3, %v5546_v33, -inf }
 0x213   : > { %v4756_v37 = vpop.f32.mrf.mxu1  ;;  %1753 = vmax.xlane.f32.xlu1 %v1752_v34 }
 0x215   : > { %v5550_v38 = vpop.f32.mrf.mxu1 }
 0x216   : > { %v1755_v39 = vsel %vm1748_vm3, %v5550_v38, -inf }
 0x217   : > { %v4761_v40 = vpop.f32.mrf.mxu1  ;;  %1756 = vmax.xlane.f32.xlu0 %v1755_v39 }
 0x219   : > { %v5554_v43 = vpop.f32.mrf.mxu1 }
 0x21a   : > { %v1758_v44 = vsel %vm1748_vm3, %v5554_v43, -inf }
 0x21b   : > { %v4766_v45 = vpop.f32.mrf.mxu1  ;;  %1759 = vmax.xlane.f32.xlu0 %v1758_v44 }
 0x21d   : > { %v5558_v46 = vpop.f32.mrf.mxu1 }
 0x21e   : > { %v1761_v49 = vsel %vm1748_vm3, %v5558_v46, -inf }
 0x21f   : > { %v4771_v50 = vpop.f32.mrf.mxu1  ;;  %1762 = vmax.xlane.f32.xlu1 %v1761_v49 }
 0x221   : > { %v5562_v5 = vpop.f32.mrf.mxu1  ;;  %v5564_v6 = vpop.f32.mrf.mxu0 }
 0x222   : > { %v1776_v7 = vsel %vm1748_vm3, %v5564_v6, -inf  ;;  %v1764_v25 = vsel %vm1748_vm3, %v5562_v5, -inf }
 0x223   : > { %v4776_v8 = vpop.f32.mrf.mxu1  ;;  %1777 = vmax.xlane.f32.xlu0 %v1776_v7  ;;  %v4796_v9 = vpop.f32.mrf.mxu0 }
 0x225   : > { %v5568_v13 = vpop.f32.mrf.mxu1  ;;  %v5570_v14 = vpop.f32.mrf.mxu0 }
 0x226   : > { %v1767_v15 = vsel %vm1748_vm3, %v5568_v13, -inf  ;;  %v1782_v16 = vsel %vm1748_vm3, %v5570_v14, -inf }
 0x227   : > { %v4781_v19 = vpop.f32.mrf.mxu1  ;;  %1768 = vmax.xlane.f32.xlu1 %v1767_v15  ;;  %1783 = vmax.xlane.f32.xlu0 %v1782_v16  ;;  %v4806_v20 = vpop.f32.mrf.mxu0 }
 0x229   : > { %v5576_v21 = vpop.f32.mrf.mxu1  ;;  %v5578_v22 = vpop.f32.mrf.mxu0 }
 0x22a   : > { %v1770_v34 = vsel %vm1748_vm3, %v5576_v21, -inf  ;;  %v1788_v44 = vsel %vm1748_vm3, %v5578_v22, -inf }
 0x22b   : > { %v4786_v26 = vpop.f32.mrf.mxu1  ;;  %1765 = vmax.xlane.f32.xlu0 %v1764_v25  ;;  %v4816_v27 = vpop.f32.mrf.mxu0 }
 0x22d   : > { %v5582_v31 = vpop.f32.mrf.mxu1  ;;  %v5584_v32 = vpop.f32.mrf.mxu0 }
 0x22e   : > { %v1794_v50 = vsel %vm1748_vm3, %v5584_v32, -inf  ;;  %v1773_v15 = vsel %vm1748_vm3, %v5582_v31, -inf }
 0x22f   : > { %v4791_v37 = vpop.f32.mrf.mxu1  ;;  %1771 = vmax.xlane.f32.xlu0 %v1770_v34  ;;  %v4826_v39 = vpop.f32.mrf.mxu0 }
 0x231   : > { %v5588_v40 = vpop.f32.mrf.mxu1 }
 0x232   : > { %v1779_v16 = vsel %vm1748_vm3, %v5588_v40, -inf }
 0x233   : > { %v4801_v45 = vpop.f32.mrf.mxu1  ;;  %1789 = vmax.xlane.f32.xlu0 %v1788_v44 }
 0x235   : > { %v5592_v49 = vpop.f32.mrf.mxu1 }
 0x237   : > { %v4811_v7 = vpop.f32.mrf.mxu1  ;;  %1795 = vmax.xlane.f32.xlu0 %v1794_v50 }
 0x238   : > { %1989 = vrot.lane.b32.xlu1 %v5384_v54, %s5181_s24  ;;  %v1785_v54 = vsel %vm1748_vm3, %v5592_v49, -inf }
 0x239   : > { %v5598_v8 = vpop.f32.mrf.mxu1 }
 0x23b   : > { %v4821_v9 = vpop.f32.mrf.mxu1 }
 0x23c   : > { %2141 = vrot.lane.b32.xlu1 %v5390_v56, %s5181_s24  ;;  %v1791_v56 = vsel %vm1748_vm3, %v5598_v8, -inf }
 0x240   : > { %2217 = vrot.lane.b32.xlu1 %v5388_v55, %s5181_s24 }
 0x24d   : > { %2065 = vrot.lane.b32.xlu0 %v5382_v53, %s5181_s24 }
 0x264   : > { %1774 = vmax.xlane.f32.xlu1 %v1773_v15 }
 0x268   : > { %1780 = vmax.xlane.f32.xlu1 %v1779_v16 }
 0x26c   : > { %1786 = vmax.xlane.f32.xlu1 %v1785_v54 }
 0x270   : > { %1792 = vmax.xlane.f32.xlu1 %v1791_v56 }
 0x298   : > { %v1751_v55 = vpop.xlane.xlu0 %1750 }
 0x299   : > { %v1797_v19 = vsub.f32 %v5542_v28, %v1751_v55 }
 0x29b   : > { %v1813_v53 = vmul.f32 1.442695, %v1797_v19 }
 0x29c   : > { %v1754_v20 = vpop.xlane.xlu1 %1753 }
 0x29d   : > { %5042 = vpow2.f32 %v1813_v53  ;;  %v1798_v25 = vsub.f32 %v5546_v33, %v1754_v20 }
 0x29f   : > { %v1815_v26 = vmul.f32 1.442695, %v1798_v25 }
 0x2a0   : > { %v1757_v27 = vpop.xlane.xlu0 %1756 }
 0x2a1   : > { %5044 = vpow2.f32 %v1815_v26  ;;  %v1799_v34 = vsub.f32 %v5550_v38, %v1757_v27 }
 0x2a3   : > { %v1817_v37 = vmul.f32 1.442695, %v1799_v34 }
 0x2a4   : > { %v1760_v39 = vpop.xlane.xlu0 %1759 }
 0x2a5   : > { %5046 = vpow2.f32 %v1817_v37  ;;  %v1800_v44 = vsub.f32 %v5554_v43, %v1760_v39 }
 0x2a7   : > { %v1819_v45 = vmul.f32 1.442695, %v1800_v44 }
 0x2a8   : > { %v1763_v50 = vpop.xlane.xlu1 %1762 }
 0x2a9   : > { %5048 = vpow2.f32 %v1819_v45  ;;  %v1801_v28 = vsub.f32 %v5558_v46, %v1763_v50 }
 0x2aa   : > { %v5619_v7 = vpop.eup %5042 }
 0x2ab   : > { %v1821_v9 = vmul.f32 1.442695, %v1801_v28  ;;  %v1845_v33 = vsel %vm1748_vm3, %v5619_v7, 0.0 }
 0x2ac   : > { %1846 = vadd.xlane.f32.xlu1 %v1845_v33  ;;  %v1778_v15 = vpop.xlane.xlu0 %1777 }
 0x2ad   : > { %5050 = vpow2.f32 %v1821_v9  ;;  %v1806_v38 = vsub.f32 %v5564_v6, %v1778_v15 }
 0x2ae   : > { %v5624_v16 = vpop.eup %5044 }
 0x2af   : > { %v1831_v54 = vmul.f32 1.442695, %v1806_v38  ;;  %v1848_v43 = vsel %vm1748_vm3, %v5624_v16, 0.0 }
 0x2b0   : > { %v1769_v56 = vpop.xlane.xlu1 %1768  ;;  %v1784_v55 = vpop.xlane.xlu0 %1783  ;;  %1849 = vadd.xlane.f32.xlu0 %v1848_v43 }
 0x2b1   : > { %5052 = vpow2.f32 %v1831_v54  ;;  %v1803_v46 = vsub.f32 %v5568_v13, %v1769_v56  ;;  %v1808_v19 = vsub.f32 %v5570_v14, %v1784_v55 }
 0x2b2   : > { %v5630_v53 = vpop.eup %5046 }
 0x2b3   : > { %v1825_v20 = vmul.f32 1.442695, %v1803_v46  ;;  %v1835_v25 = vmul.f32 1.442695, %v1808_v19  ;;  %v1851_v6 = vsel %vm1748_vm3, %v5630_v53, 0.0 }
 0x2b4   : > { %v1990_v26 = vpop.permute.xlu1 %1989  ;;  %1852 = vadd.xlane.f32.xlu1 %v1851_v6  ;;  %v1766_v27 = vpop.xlane.xlu0 %1765 }
 0x2b5   : > { %5054 = vpow2.f32 %v1825_v20  ;;  %v1802_v34 = vsub.f32 %v5562_v5, %v1766_v27  ;;  %4828 = vmatpush3.msra.mxu1 %v1990_v26 }
 0x2b6   : > { %v5635_v37 = vpop.eup %5048  ;;  %5056 = vpow2.f32 %v1835_v25  ;;  %4837 = vmatprep.subr.mxu1 %v5178_v52 }
 0x2b7   : > { %v1823_v13 = vmul.f32 1.442695, %v1802_v34  ;;  %v1854_v14 = vsel %vm1748_vm3, %v5635_v37, 0.0 }
 0x2b8   : > { %v1772_v39 = vpop.xlane.xlu0 %1771  ;;  %1855 = vadd.xlane.f32.xlu0 %v1854_v14  ;;  %v5684_v14 = vpop.permute.xlu1 %2141 }
 0x2b9   : > { %5058 = vpow2.f32 %v1823_v13  ;;  %v1804_v9 = vsub.f32 %v5576_v21, %v1772_v39 }
 0x2ba   : > { %v5640_v44 = vpop.eup %5050 }
 0x2bb   : > { %v1857_v45 = vsel %vm1748_vm3, %v5640_v44, 0.0  ;;  %v1827_v55 = vmul.f32 1.442695, %v1804_v9 }
 0x2bc   : > { %1858 = vadd.xlane.f32.xlu1 %v1857_v45  ;;  %v1790_v5 = vpop.xlane.xlu0 %1789  ;;  %v5688_v39 = vpop.permute.xlu1 %2217 }
 0x2bd   : > { %v1810_v50 = vsub.f32 %v5578_v22, %v1790_v5 }
 0x2be   : > { %v5645_v28 = vpop.eup %5052 }
 0x2bf   : > { %v1839_v33 = vmul.f32 1.442695, %v1810_v50  ;;  %v1872_v15 = vsel %vm1748_vm3, %v5645_v28, 0.0 }
 0x2c0   : > { %1873 = vadd.xlane.f32.xlu0 %v1872_v15  ;;  %v1796_v38 = vpop.xlane.xlu0 %1795  ;;  %v5725_v15 = vld [vmem:[%s6306_s2 + $0x18] sm:$0xff] }
 0x2c1   : > { %5060 = vpow2.f32 %v1839_v33  ;;  %v1812_v54 = vsub.f32 %v5584_v32, %v1796_v38  ;;  %v5732_v38 = vld [vmem:[%s6306_s2 + $0x8] sm:$0xff] }
 0x2c2   : > { %v5651_v43 = vpop.eup %5054 }
 0x2c3   : > { %v5653_v56 = vpop.eup %5056  ;;  %v1843_v46 = vmul.f32 1.442695, %v1812_v54  ;;  %v1863_v22 = vsel %vm1748_vm3, %v5651_v43, 0.0  ;;  %v5741_v54 = vld [vmem:[%s6306_s2 + $0x10] sm:$0xff] }
 0x2c4   : > { %1864 = vadd.xlane.f32.xlu1 %v1863_v22  ;;  %v1878_v21 = vsel %vm1748_vm3, %v5653_v56, 0.0  ;;  %v2066_v19 = vpop.permute.xlu0 %2065 }
 0x2c5   : > { %5062 = vpow2.f32 %v1843_v46  ;;  %1879 = vadd.xlane.f32.xlu0 %v1878_v21  ;;  %4833 = vmatpush3.msra.mxu0 %v2066_v19 }
 0x2c6   : > { %v5659_v20 = vpop.eup %5058  ;;  %4842 = vmatprep.subr.mxu0 %v5178_v52  ;;  %5064 = vpow2.f32 %v1827_v55  ;;  %v5748_v55 = vld [vmem:[%s6306_s2] sm:$0xff] }
 0x2c7   : > { %v1860_v32 = vsel %vm1748_vm3, %v5659_v20, 0.0 }
 0x2c9   : > { %1861 = vadd.xlane.f32.xlu0 %v1860_v32 }
 0x2ce   : > { %v5664_v25 = vpop.eup %5060 }
 0x2cf   : > { %v1884_v6 = vsel %vm1748_vm3, %v5664_v25, 0.0 }
 0x2d0   : > { %1885 = vadd.xlane.f32.xlu0 %v1884_v6 }
 0x2d2   : > { %v5668_v26 = vpop.eup %5062 }
 0x2d3   : > { %v1890_v27 = vsel %vm1748_vm3, %v5668_v26, 0.0  ;;  %v5672_v34 = vpop.eup %5064 }
 0x2d4   : > { %1891 = vadd.xlane.f32.xlu0 %v1890_v27  ;;  %v1866_v13 = vsel %vm1748_vm3, %v5672_v34, 0.0 }
 0x2d5   : > { %2369 = vrot.lane.b32.xlu1 %v5396_v57, %s5181_s24 }
 0x2d8   : > { %1867 = vadd.xlane.f32.xlu0 %v1866_v13 }
 0x2d9   : > { %2521 = vrot.lane.b32.xlu1 %v5404_v59, %s5181_s24 }
 0x2dd   : > { %2673 = vrot.lane.b32.xlu1 %v5412_v61, %s5181_s24 }
 0x2e1   : > { %2825 = vrot.lane.b32.xlu1 %v5420_v63, %s5181_s24 }
 0x2e5   : > { %2977 = vrot.lane.b32.xlu1 %v5428_v1, %s5181_s24 }
 0x2ed   : > { %v1775_v57 = vpop.xlane.xlu1 %1774 }
 0x2ee   : > { %2293 = vrot.lane.b32.xlu0 %v5398_v58, %s5181_s24  ;;  %v1805_v45 = vsub.f32 %v5582_v31, %v1775_v57 }
 0x2f0   : > { %v1829_v61 = vmul.f32 1.442695, %v1805_v45 }
 0x2f1   : > { %v1781_v59 = vpop.xlane.xlu1 %1780 }
 0x2f2   : > { %2445 = vrot.lane.b32.xlu0 %v5406_v60, %s5181_s24  ;;  %v1807_v63 = vsub.f32 %v5588_v40, %v1781_v59  ;;  %5066 = vpow2.f32 %v1829_v61 }
 0x2f4   : > { %v1833_v1 = vmul.f32 1.442695, %v1807_v63 }
 0x2f5   : > { %v1787_v5 = vpop.xlane.xlu1 %1786 }
 0x2f6   : > { %2597 = vrot.lane.b32.xlu0 %v5414_v62, %s5181_s24  ;;  %v1809_v50 = vsub.f32 %v5592_v49, %v1787_v5  ;;  %5068 = vpow2.f32 %v1833_v1 }
 0x2f8   : > { %v1837_v58 = vmul.f32 1.442695, %v1809_v50 }
 0x2f9   : > { %v1793_v9 = vpop.xlane.xlu1 %1792 }
 0x2fa   : > { %2749 = vrot.lane.b32.xlu0 %v5422_v0, %s5181_s24  ;;  %v1811_v31 = vsub.f32 %v5598_v8, %v1793_v9  ;;  %5070 = vpow2.f32 %v1837_v58 }
 0x2fc   : > { %v1841_v60 = vmul.f32 1.442695, %v1811_v31 }
 0x2fe   : > { %2901 = vrot.lane.b32.xlu0 %v5430_v2, %s5181_s24  ;;  %5072 = vpow2.f32 %v1841_v60 }
 0x2ff   : > { %v5706_v62 = vpop.eup %5066 }
 0x300   : > { %v1869_v40 = vsel %vm1748_vm3, %v5706_v62, 0.0 }
 0x302   : > { %3053 = vrot.lane.b32.xlu0 %v5438_v4, %s5181_s24 }
 0x303   : > { %v5710_v49 = vpop.eup %5068 }
 0x304   : > { %v1875_v0 = vsel %vm1748_vm3, %v5710_v49, 0.0 }
 0x306   : > { %3244 = vrot.lane.b32.xlu0 %v5725_v15, %s5182_s27 }
 0x307   : > { %v5714_v8 = vpop.eup %5070 }
 0x308   : > { %v1881_v2 = vsel %vm1748_vm3, %v5714_v8, 0.0 }
 0x309   : > { %1870 = vadd.xlane.f32.xlu1 %v1869_v40 }
 0x30a   : > { %3240 = vrot.lane.b32.xlu0 %v5732_v38, %s5182_s27 }
 0x30b   : > { %v5718_v33 = vpop.eup %5072 }
 0x30c   : > { %v1887_v4 = vsel %vm1748_vm3, %v5718_v33, 0.0 }
 0x30d   : > { %1876 = vadd.xlane.f32.xlu1 %v1875_v0 }
 0x30e   : > { %3677 = vrot.lane.b32.xlu0 %v5725_v15, %s5183_s19 }
 0x311   : > { %1882 = vadd.xlane.f32.xlu1 %v1881_v2 }
 0x315   : > { %1888 = vadd.xlane.f32.xlu1 %v1887_v4 }
 0x326   : > { %3129 = vrot.lane.b32.xlu1 %v5436_v3, %s5181_s24 }
 0x32a   : > { %3242 = vrot.lane.b32.xlu1 %v5741_v54, %s5182_s27 }
 0x32e   : > { %3238 = vrot.lane.b32.xlu1 %v5748_v55, %s5182_s27 }
 0x332   : > { %3675 = vrot.lane.b32.xlu1 %v5741_v54, %s5183_s19 }
 0x335   : > { %v1847_v46 = vpop.xlane.xlu1 %1846 }
 0x336   : > { %5074 = vrcp.f32 %v1847_v46  ;;  %3673 = vrot.lane.b32.xlu1 %v5732_v38, %s5183_s19 }
 0x339   : > { %v1850_v3 = vpop.xlane.xlu0 %1849 }
 0x33a   : > { %5076 = vrcp.f32 %v1850_v3 }
 0x33d   : > { %v1853_v22 = vpop.xlane.xlu1 %1852 }
 0x33e   : > { %5078 = vrcp.f32 %v1853_v22 }
 0x341   : > { %v1856_v21 = vpop.xlane.xlu0 %1855 }
 0x342   : > { %5080 = vrcp.f32 %v1856_v21 }
 0x343   : > { %v5075_v19 = vpop.eup %5074 }
 0x344   : > { %v1909_v32 = vmul.f32 %v5075_v19, %v1847_v46 }
 0x345   : > { %v1859_v6 = vpop.xlane.xlu1 %1858 }
 0x346   : > { %v1925_v27 = vsub.f32 2.0, %v1909_v32  ;;  %5082 = vrcp.f32 %v1859_v6 }
 0x347   : > { %v5077_v13 = vpop.eup %5076 }
 0x348   : > { %v1941_v57 = vmul.f32 %v5075_v19, %v1925_v27  ;;  %v1910_v45 = vmul.f32 %v5077_v13, %v1850_v3 }
 0x349   : > { %v1874_v59 = vpop.xlane.xlu0 %1873 }
 0x34a   : > { %v1957_v61 = vmul.f32 %v5619_v7, %v1941_v57  ;;  %v1926_v63 = vsub.f32 2.0, %v1910_v45  ;;  %5084 = vrcp.f32 %v1874_v59 }
 0x34b   : > { %v5079_v5 = vpop.eup %5078 }
 0x34c   : > { %1973 = vst.msk [vmem:[%s5756_s13] sm:$0xff] %vm1748_vm3, %v1957_v61  ;;  %v1942_v1 = vmul.f32 %v5077_v13, %v1926_v63  ;;  %v1911_v50 = vmul.f32 %v5079_v5, %v1853_v22  ;;  %4830 = vmatmul.mubr.msk.f32.vlgmr.msra.gmra.mxu1 %vm1748_vm3, %v1957_v61 }
 0x34d   : > { %4838 = vmatpush3.msra.mxu1 %v5684_v14  ;;  %v1865_v9 = vpop.xlane.xlu1 %1864  ;;  %4839 = vmatprep.mubr.msk.f32.mxu1 %vm5179_vm1, %v5178_v52 }
 0x34e   : > { %v1958_v58 = vmul.f32 %v5624_v16, %v1942_v1  ;;  %v1927_v31 = vsub.f32 2.0, %v1911_v50  ;;  %5086 = vrcp.f32 %v1865_v9  ;;  %v1880_v7 = vpop.xlane.xlu0 %1879  ;;  %4847 = vmatprep.subr.mxu1 %v5178_v52 }
 0x34f   : > { %v5081_v60 = vpop.eup %5080  ;;  %5088 = vrcp.f32 %v1880_v7 }
 0x350   : > { %1974 = vst.msk [vmem:[%s5756_s13 + $0x8] sm:$0xff] %vm1748_vm3, %v1958_v58  ;;  %v1943_v40 = vmul.f32 %v5079_v5, %v1927_v31  ;;  %v1912_v0 = vmul.f32 %v5081_v60, %v1856_v21  ;;  %4835 = vmatmul.mubr.msk.f32.vlgmr.msra.gmra.mxu0 %vm1748_vm3, %v1958_v58 }
 0x351   : > { %4843 = vmatpush3.msra.mxu0 %v5688_v39  ;;  %4844 = vmatprep.mubr.msk.f32.mxu0 %vm5179_vm1, %v5178_v52  ;;  %v2370_v32 = vpop.permute.xlu1 %2369 }
 0x352   : > { %v1959_v16 = vmul.f32 %v5630_v53, %v1943_v40  ;;  %v1928_v14 = vsub.f32 2.0, %v1912_v0  ;;  %v1862_v2 = vpop.xlane.xlu0 %1861  ;;  %4852 = vmatprep.subr.mxu0 %v5178_v52 }
 0x353   : > { %v5083_v4 = vpop.eup %5082  ;;  %5090 = vrcp.f32 %v1862_v2 }
 0x354   : > { %1975 = vst.msk [vmem:[%s5756_s13 + $0x10] sm:$0xff] %vm1748_vm3, %v1959_v16  ;;  %v1944_v46 = vmul.f32 %v5081_v60, %v1928_v14  ;;  %v1913_v3 = vmul.f32 %v5083_v4, %v1859_v6  ;;  %4840 = vmatmul.mubr.msk.f32.vlgmr.msra.gmra.mxu1 %vm1748_vm3, %v1959_v16 }
 0x355   : > { %4849 = vmatprep.mubr.msk.f32.mxu1 %vm5179_vm1, %v5178_v52 }
 0x356   : > { %v1960_v39 = vmul.f32 %v5635_v37, %v1944_v46  ;;  %v1929_v22 = vsub.f32 2.0, %v1913_v3 }
 0x357   : > { %v5085_v53 = vpop.eup %5084 }
 0x358   : > { %1976 = vst.msk [vmem:[%s5756_s13 + $0x18] sm:$0xff] %vm1748_vm3, %v1960_v39  ;;  %v1945_v21 = vmul.f32 %v5083_v4, %v1929_v22  ;;  %v1918_v19 = vmul.f32 %v5085_v53, %v1874_v59  ;;  %4845 = vmatmul.mubr.msk.f32.vlgmr.msra.gmra.mxu0 %vm1748_vm3, %v1960_v39 }
 0x359   : > { %4853 = vmatpush3.msra.mxu0 %v2370_v32  ;;  %v1886_v27 = vpop.xlane.xlu0 %1885  ;;  %4854 = vmatprep.mubr.msk.f32.mxu0 %vm5179_vm1, %v5178_v52 }
 0x35a   : > { %v1961_v6 = vmul.f32 %v5640_v44, %v1945_v21  ;;  %v1934_v13 = vsub.f32 2.0, %v1918_v19  ;;  %5092 = vrcp.f32 %v1886_v27  ;;  %4862 = vmatprep.subr.mxu0 %v5178_v52 }
 0x35b   : > { %v5087_v37 = vpop.eup %5086 }
 0x35c   : > { %v5089_v57 = vpop.eup %5088  ;;  %1977 = vst.msk [vmem:[%s5756_s13 + $0x20] sm:$0xff] %vm1748_vm3, %v1961_v6  ;;  %v1950_v45 = vmul.f32 %v5085_v53, %v1934_v13  ;;  %v1915_v59 = vmul.f32 %v5087_v37, %v1865_v9 }
 0x35d   : > { %v1920_v61 = vmul.f32 %v5089_v57, %v1880_v7  ;;  %v1892_v63 = vpop.xlane.xlu0 %1891 }
 0x35e   : > { %v1966_v5 = vmul.f32 %v5645_v28, %v1950_v45  ;;  %v1931_v1 = vsub.f32 2.0, %v1915_v59  ;;  %5094 = vrcp.f32 %v1892_v63 }
 0x35f   : > { %v1936_v44 = vsub.f32 2.0, %v1920_v61 }
 0x360   : > { %v5091_v50 = vpop.eup %5090  ;;  %1982 = vst.msk [vmem:[%s5756_s13 + $0x48] sm:$0xff] %vm1748_vm3, %v1966_v5  ;;  %v1947_v58 = vmul.f32 %v5087_v37, %v1931_v1 }
 0x361   : > { %v1952_v31 = vmul.f32 %v5089_v57, %v1936_v44  ;;  %v1914_v60 = vmul.f32 %v5091_v50, %v1862_v2  ;;  %v1868_v40 = vpop.xlane.xlu0 %1867 }
 0x362   : > { %v1963_v0 = vmul.f32 %v5651_v43, %v1947_v58  ;;  %5096 = vrcp.f32 %v1868_v40  ;;  %v2522_v43 = vpop.permute.xlu1 %2521 }
 0x363   : > { %v1968_v9 = vmul.f32 %v5653_v56, %v1952_v31  ;;  %v1930_v7 = vsub.f32 2.0, %v1914_v60 }
 0x364   : > { %1979 = vst.msk [vmem:[%s5756_s13 + $0x30] sm:$0xff] %vm1748_vm3, %v1963_v0 }
 0x365   : > { %1984 = vst.msk [vmem:[%s5756_s13 + $0x58] sm:$0xff] %vm1748_vm3, %v1968_v9  ;;  %v1946_v28 = vmul.f32 %v5091_v50, %v1930_v7  ;;  %v2294_v16 = vpop.permute.xlu0 %2293 }
 0x366   : > { %4848 = vmatpush3.msra.mxu1 %v2294_v16  ;;  %v2674_v37 = vpop.permute.xlu1 %2673 }
 0x367   : > { %v5093_v14 = vpop.eup %5092  ;;  %v1962_v4 = vmul.f32 %v5659_v20, %v1946_v28  ;;  %4850 = vmatmul.mubr.msk.f32.vlgmr.msra.gmra.mxu1 %vm1748_vm3, %v1961_v6  ;;  %4857 = vmatprep.subr.mxu1 %v5178_v52 }
 0x368   : > { %v1922_v2 = vmul.f32 %v5093_v14, %v1886_v27  ;;  %4859 = vmatprep.mubr.msk.f32.mxu1 %vm5179_vm1, %v5178_v52 }
 0x369   : > { %1978 = vst.msk [vmem:[%s5756_s13 + $0x28] sm:$0xff] %vm1748_vm3, %v1962_v4  ;;  %4855 = vmatmul.mubr.msk.f32.vlgmr.msra.gmra.mxu0 %vm1748_vm3, %v1962_v4  ;;  %v2446_v56 = vpop.permute.xlu0 %2445 }
 0x36a   : > { %v1938_v46 = vsub.f32 2.0, %v1922_v2  ;;  %4863 = vmatpush3.msra.mxu0 %v2522_v43  ;;  %4858 = vmatpush3.msra.mxu1 %v2446_v56 }
 0x36b   : > { %v5095_v3 = vpop.eup %5094  ;;  %4860 = vmatmul.mubr.msk.f32.vlgmr.msra.gmra.mxu1 %vm1748_vm3, %v1963_v0  ;;  %4867 = vmatprep.subr.mxu1 %v5178_v52 }
 0x36c   : > { %v1954_v20 = vmul.f32 %v5093_v14, %v1938_v46  ;;  %v1924_v39 = vmul.f32 %v5095_v3, %v1892_v63  ;;  %4864 = vmatprep.mubr.msk.f32.mxu0 %vm5179_vm1, %v5178_v52  ;;  %4872 = vmatprep.subr.mxu0 %v5178_v52 }
 0x36d   : > { %v2598_v22 = vpop.permute.xlu0 %2597  ;;  %4869 = vmatprep.mubr.msk.f32.mxu1 %vm5179_vm1, %v5178_v52 }
 0x36e   : > { %v1970_v53 = vmul.f32 %v5664_v25, %v1954_v20  ;;  %v1940_v21 = vsub.f32 2.0, %v1924_v39  ;;  %4868 = vmatpush3.msra.mxu1 %v2598_v22  ;;  %v2826_v25 = vpop.permute.xlu1 %2825 }
 0x36f   : > { %v5097_v19 = vpop.eup %5096  ;;  %4877 = vmatprep.subr.mxu1 %v5178_v52 }
 0x370   : > { %1986 = vst.msk [vmem:[%s5756_s13 + $0x68] sm:$0xff] %vm1748_vm3, %v1970_v53  ;;  %v1956_v32 = vmul.f32 %v5095_v3, %v1940_v21  ;;  %v1916_v27 = vmul.f32 %v5097_v19, %v1868_v40 }
 0x371   : > { %v2750_v1 = vpop.permute.xlu0 %2749 }
 0x372   : > { %v1972_v6 = vmul.f32 %v5668_v26, %v1956_v32  ;;  %v1932_v13 = vsub.f32 2.0, %v1916_v27  ;;  %v2978_v26 = vpop.permute.xlu1 %2977 }
 0x374   : > { %1988 = vst.msk [vmem:[%s5756_s13 + $0x78] sm:$0xff] %vm1748_vm3, %v1972_v6  ;;  %v1948_v57 = vmul.f32 %v5097_v19, %v1932_v13 }
 0x375   : > { %v2902_v0 = vpop.permute.xlu0 %2901 }
 0x376   : > { %v1964_v45 = vmul.f32 %v5672_v34, %v1948_v57 }
 0x378   : > { %1980 = vst.msk [vmem:[%s5756_s13 + $0x38] sm:$0xff] %vm1748_vm3, %v1964_v45  ;;  %4865 = vmatmul.mubr.msk.f32.vlgmr.msra.gmra.mxu0 %vm1748_vm3, %v1964_v45 }
 0x379   : > { %4873 = vmatpush3.msra.mxu0 %v2674_v37  ;;  %4874 = vmatprep.mubr.msk.f32.mxu0 %vm5179_vm1, %v5178_v52 }
 0x37a   : > { %4882 = vmatprep.subr.mxu0 %v5178_v52 }
 0x37c   : > { %4875 = vmatmul.mubr.msk.f32.vlgmr.msra.gmra.mxu0 %vm1748_vm3, %v1966_v5 }
 0x37d   : > { %4883 = vmatpush3.msra.mxu0 %v2826_v25  ;;  %4884 = vmatprep.mubr.msk.f32.mxu0 %vm5179_vm1, %v5178_v52 }
 0x37e   : > { %4892 = vmatprep.subr.mxu0 %v5178_v52 }
 0x380   : > { %4885 = vmatmul.mubr.msk.f32.vlgmr.msra.gmra.mxu0 %vm1748_vm3, %v1968_v9 }
 0x381   : > { %4893 = vmatpush3.msra.mxu0 %v2978_v26  ;;  %4894 = vmatprep.mubr.msk.f32.mxu0 %vm5179_vm1, %v5178_v52 }
 0x382   : > { %4902 = vmatprep.subr.mxu0 %v5178_v52 }
 0x384   : > { %4895 = vmatmul.mubr.msk.f32.vlgmr.msra.gmra.mxu0 %vm1748_vm3, %v1970_v53 }
 0x385   : > { %4904 = vmatprep.mubr.msk.f32.mxu0 %vm5179_vm1, %v5178_v52 }
 0x392   : > { %v1871_v34 = vpop.xlane.xlu1 %1870 }
 0x393   : > { %5098 = vrcp.f32 %v1871_v34 }
 0x396   : > { %v1877_v59 = vpop.xlane.xlu1 %1876 }
 0x397   : > { %5100 = vrcp.f32 %v1877_v59 }
 0x39a   : > { %v1883_v61 = vpop.xlane.xlu1 %1882 }
 0x39b   : > { %5102 = vrcp.f32 %v1883_v61 }
 0x39e   : > { %v1889_v63 = vpop.xlane.xlu1 %1888 }
 0x39f   : > { %5104 = vrcp.f32 %v1889_v63 }
 0x3a0   : > { %v5099_v5 = vpop.eup %5098 }
 0x3a1   : > { %v1917_v44 = vmul.f32 %v5099_v5, %v1871_v34 }
 0x3a2   : > { %v3130_v50 = vpop.permute.xlu1 %3129 }
 0x3a3   : > { %v1933_v58 = vsub.f32 2.0, %v1917_v44  ;;  %4903 = vmatpush3.msra.mxu0 %v3130_v50 }
 0x3a4   : > { %v5101_v31 = vpop.eup %5100  ;;  %4905 = vmatmul.mubr.msk.f32.vlgmr.msra.gmra.mxu0 %vm1748_vm3, %v1972_v6 }
 0x3a5   : > { %v1949_v60 = vmul.f32 %v5099_v5, %v1933_v58  ;;  %v1919_v40 = vmul.f32 %v5101_v31, %v1877_v59 }
 0x3a6   : > { %v3243_v22 = vpop.permute.xlu1 %3242 }
 0x3a7   : > { %v1965_v9 = vmul.f32 %v5706_v62, %v1949_v60  ;;  %v1935_v7 = vsub.f32 2.0, %v1919_v40  ;;  %v3054_v62 = vpop.permute.xlu0 %3053  ;;  %v3226_v40 = vld [vmem:[%s6307_s3 + $0x8] sm:$0xff] }
 0x3a8   : > { %v5103_v28 = vpop.eup %5102  ;;  %4939 = vmatprep.subr.mxu0 %v3226_v40 }
 0x3a9   : > { %1981 = vst.msk [vmem:[%s5756_s13 + $0x40] sm:$0xff] %vm1748_vm3, %v1965_v9  ;;  %v1951_v16 = vmul.f32 %v5101_v31, %v1935_v7  ;;  %v1921_v14 = vmul.f32 %v5103_v28, %v1883_v61  ;;  %4870 = vmatmul.mubr.msk.f32.vlgmr.msra.gmra.mxu1 %vm1748_vm3, %v1965_v9  ;;  %4940 = vmatpush3.msra.mxu0 %v3226_v40 }
 0x3aa   : > { %4878 = vmatpush3.msra.mxu1 %v2750_v1  ;;  %4879 = vmatprep.mubr.msk.f32.mxu1 %vm5179_vm1, %v5178_v52  ;;  %v3239_v21 = vpop.permute.xlu1 %3238 }
 0x3ab   : > { %v1967_v4 = vmul.f32 %v5710_v49, %v1951_v16  ;;  %v1937_v2 = vsub.f32 2.0, %v1921_v14  ;;  %4887 = vmatprep.subr.mxu1 %v5178_v52  ;;  %v3245_v49 = vpop.permute.xlu0 %3244 }
 0x3ac   : > { %v5105_v43 = vpop.eup %5104 }
 0x3ad   : > { %1983 = vst.msk [vmem:[%s5756_s13 + $0x50] sm:$0xff] %vm1748_vm3, %v1967_v4  ;;  %v1953_v56 = vmul.f32 %v5103_v28, %v1937_v2  ;;  %v1923_v46 = vmul.f32 %v5105_v43, %v1889_v63  ;;  %4880 = vmatmul.mubr.msk.f32.vlgmr.msra.gmra.mxu1 %vm1748_vm3, %v1967_v4 }
 0x3ae   : > { %4888 = vmatpush3.msra.mxu1 %v2902_v0  ;;  %4889 = vmatprep.mubr.msk.f32.mxu1 %vm5179_vm1, %v5178_v52  ;;  %v5910_v0 = vld [vmem:[%s6307_s3] sm:$0xff] }
 0x3af   : > { %v1969_v3 = vmul.f32 %v5714_v8, %v1953_v56  ;;  %v1939_v20 = vsub.f32 2.0, %v1923_v46  ;;  %4897 = vmatprep.subr.mxu1 %v5178_v52  ;;  %v3241_v8 = vpop.permute.xlu0 %3240  ;;  %4941 = vmatprep.subr.mxu0 %v5910_v0 }
 0x3b0   : > { %4942 = vmatpush3.msra.mxu0 %v5910_v0 }
 0x3b1   : > { %1985 = vst.msk [vmem:[%s5756_s13 + $0x60] sm:$0xff] %vm1748_vm3, %v1969_v3  ;;  %v1955_v39 = vmul.f32 %v5105_v43, %v1939_v20  ;;  %4890 = vmatmul.mubr.msk.f32.vlgmr.msra.gmra.mxu1 %vm1748_vm3, %v1969_v3 }
 0x3b2   : > { %4898 = vmatpush3.msra.mxu1 %v3054_v62  ;;  %4899 = vmatprep.mubr.msk.f32.mxu1 %vm5179_vm1, %v5178_v52 }
 0x3b3   : > { %v1971_v53 = vmul.f32 %v5718_v33, %v1955_v39  ;;  %4907 = vmatprep.subr.mxu1 %v3245_v49 }
 0x3b5   : > { %1987 = vst.msk [vmem:[%s5756_s13 + $0x70] sm:$0xff] %vm1748_vm3, %v1971_v53  ;;  %4900 = vmatmul.mubr.msk.f32.vlgmr.msra.gmra.mxu1 %vm1748_vm3, %v1971_v53 }
 0x3b6   : > { %4908 = vmatpush3.msra.mxu1 %v3245_v49 }
 0x3b7   : > { %4909 = vmatprep.subr.mxu1 %v3243_v22 }
 0x3b8   : > { %4910 = vmatpush3.msra.mxu1 %v3243_v22 }
 0x3b9   : > { %4911 = vmatprep.subr.mxu1 %v3241_v8 }
 0x3ba   : > { %4912 = vmatpush3.msra.mxu1 %v3241_v8 }
 0x3bb   : > { %4913 = vmatprep.subr.mxu1 %v3239_v21 }
 0x3bc   : > { %4914 = vmatpush3.msra.mxu1 %v3239_v21 }
 0x40c   : > { %v2061_v19 = vpop.f32.mrf.mxu1 }
 0x40d   : > { %v5865_v52 = vadd.f32 %v2061_v19, %v5260_v10 }
 0x40e   : > { %v4831_v32 = vpop.f32.mrf.mxu1 }
 0x40f   : > { %4915 = vmatprep.mubr.msk.f32.mxu1 %vm321_vm0, %v5865_v52 }
 0x410   : > { %v2137_v33 = vpop.f32.mrf.mxu0 }
 0x411   : > { %v5870_v27 = vadd.f32 %v2137_v33, %v5262_v11 }
 0x412   : > { %v4836_v6 = vpop.f32.mrf.mxu0 }
 0x413   : > { %4916 = vmatmul.mubr.msk.f32.vlgmr.msra.gmra.mxu1 %vm321_vm0, %v5870_v27 }
 0x414   : > { %v2213_v13 = vpop.f32.mrf.mxu1 }
 0x415   : > { %v5875_v37 = vadd.f32 %v2213_v13, %v5264_v12 }
 0x416   : > { %v4841_v57 = vpop.f32.mrf.mxu1 }
 0x417   : > { %4918 = vmatprep.mubr.msk.f32.mxu1 %vm321_vm0, %v5875_v37  ;;  %v3678_v57 = vpop.permute.xlu0 %3677 }
 0x418   : > { %v2289_v10 = vpop.f32.mrf.mxu0  ;;  %4967 = vmatprep.subr.mxu0 %v3678_v57 }
 0x419   : > { %v5880_v45 = vadd.f32 %v2289_v10, %v5278_v17  ;;  %v3676_v10 = vpop.permute.xlu1 %3675 }
 0x41a   : > { %v4846_v25 = vpop.f32.mrf.mxu0 }
 0x41b   : > { %4919 = vmatmul.mubr.msk.f32.gmra.mxu1 %vm321_vm0, %v5880_v45 }
 0x427   : > { %v2365_v11 = vpop.f32.mrf.mxu1 }
 0x428   : > { %v5885_v26 = vadd.f32 %v2365_v11, %v5282_v18 }
 0x429   : > { %v2441_v34 = vpop.f32.mrf.mxu0  ;;  %v4851_v59 = vpop.f32.mrf.mxu1 }
 0x42a   : > { %v5888_v12 = vadd.f32 %v2441_v34, %v5294_v23  ;;  %4921 = vmatprep.mubr.msk.f32.mxu1 %vm321_vm0, %v5885_v26 }
 0x42b   : > { %v4856_v61 = vpop.f32.mrf.mxu0  ;;  %v2517_v63 = vpop.f32.mrf.mxu1 }
 0x42c   : > { %v5893_v17 = vadd.f32 %v2517_v63, %v5298_v24  ;;  %4922 = vmatmul.mubr.msk.f32.gmra.mxu1 %vm321_vm0, %v5888_v12 }
 0x42d   : > { %v4861_v5 = vpop.f32.mrf.mxu1 }
 0x42e   : > { %4924 = vmatprep.mubr.msk.f32.mxu1 %vm321_vm0, %v5893_v17 }
 0x438   : > { %v2593_v18 = vpop.f32.mrf.mxu0 }
 0x439   : > { %v5900_v1 = vadd.f32 %v2593_v18, %v5310_v29  ;;  %v3674_v18 = vpop.permute.xlu1 %3673 }
 0x43a   : > { %v4866_v23 = vpop.f32.mrf.mxu0 }
 0x43b   : > { %4925 = vmatmul.mubr.msk.f32.gmra.mxu1 %vm321_vm0, %v5900_v1 }
 0x43c   : > { %v2745_v44 = vpop.f32.mrf.mxu0 }
 0x43d   : > { %v5918_v16 = vadd.f32 %v2745_v44, %v5326_v35 }
 0x43e   : > { %v4876_v50 = vpop.f32.mrf.mxu0 }
 0x440   : > { %v2897_v58 = vpop.f32.mrf.mxu0 }
 0x441   : > { %v5928_v43 = vadd.f32 %v2897_v58, %v5342_v41 }
 0x442   : > { %v4886_v24 = vpop.f32.mrf.mxu0 }
 0x444   : > { %v3049_v31 = vpop.f32.mrf.mxu0 }
 0x445   : > { %v5938_v56 = vadd.f32 %v3049_v31, %v5358_v47 }
 0x446   : > { %v4896_v60 = vpop.f32.mrf.mxu0 }
 0x464   : > { %v3201_v29 = vpop.f32.mrf.mxu0 }
 0x465   : > { %v5948_v3 = vadd.f32 %v3201_v29, %v5370_v51 }
 0x466   : > { %v4906_v9 = vpop.f32.mrf.mxu0 }
 0x469   : > { %v2669_v7 = vpop.f32.mrf.mxu1 }
 0x46a   : > { %v5915_v28 = vadd.f32 %v2669_v7, %v5314_v30 }
 0x46b   : > { %v4871_v14 = vpop.f32.mrf.mxu1 }
 0x46c   : > { %4927 = vmatprep.mubr.msk.f32.mxu1 %vm321_vm0, %v5915_v28 }
 0x46d   : > { %v2821_v4 = vpop.f32.mrf.mxu1  ;;  %4928 = vmatmul.mubr.msk.f32.gmra.mxu1 %vm321_vm0, %v5918_v16 }
 0x46e   : > { %v5925_v2 = vadd.f32 %v2821_v4, %v5330_v36 }
 0x46f   : > { %v4881_v62 = vpop.f32.mrf.mxu1 }
 0x470   : > { %4930 = vmatprep.mubr.msk.f32.mxu1 %vm321_vm0, %v5925_v2 }
 0x471   : > { %v2973_v30 = vpop.f32.mrf.mxu1  ;;  %4931 = vmatmul.mubr.msk.f32.gmra.mxu1 %vm321_vm0, %v5928_v43 }
 0x472   : > { %v5935_v35 = vadd.f32 %v2973_v30, %v5346_v42  ;;  %v5959_v42 = vld [vmem:[%s6308_s4] ss:$0 sm:$0xff] }
 0x473   : > { %v4891_v46 = vpop.f32.mrf.mxu1  ;;  %3459 = vrot.lane.b32.xlu0 %v5959_v42, %s5180_s17  ;;  %3683 = vrot.lane.b32.xlu1 %v5959_v42, %s5184_s23 }
 0x474   : > { %4933 = vmatprep.mubr.msk.f32.mxu1 %vm321_vm0, %v5935_v35 }
 0x475   : > { %v3125_v36 = vpop.f32.mrf.mxu1  ;;  %4934 = vmatmul.mubr.msk.f32.gmra.mxu1 %vm321_vm0, %v5938_v56 }
 0x476   : > { %v5945_v41 = vadd.f32 %v3125_v36, %v5362_v48 }
 0x477   : > { %v4901_v20 = vpop.f32.mrf.mxu1  ;;  %3671 = vrot.lane.b32.xlu0 %v5748_v55, %s5183_s19  ;;  %3897 = vrot.lane.b32.xlu1 %v5910_v0, %s5181_s24 }
 0x478   : > { %4936 = vmatprep.mubr.msk.f32.mxu1 %vm321_vm0, %v5945_v41 }
 0x479   : > { %4937 = vmatmul.mubr.msk.f32.gmra.mxu1 %vm321_vm0, %v5948_v3 }
 0x47b   : > { %3899 = vrot.lane.b32.xlu0 %v3226_v40, %s5181_s24 }
 0x47f   : > { %3903 = vrot.lane.b32.xlu0 %v5959_v42, %s5182_s27 }
 0x4d3   : > { %v4917_v47 = vpop.f32.mrf.mxu1 }
 0x4d4   : > { %v3370_v48 = vadd.f32 %v4917_v47, %v5959_v42 }
 0x4d5   : > { %v3364_v51 = vpop.f32.mrf.mxu1 }
 0x4d6   : > { %v3365_v15 = vadd.f32 %v5959_v42, %v3364_v51  ;;  %v3444_v49 = vmax.f32 %v3370_v48, 0.0 }
 0x4d8   : > { %v3443_v54 = vmax.f32 %v3365_v15, 0.0 }
 0x4da   : > { %4943 = vmatprep.mubr.msk.f32.mxu0 %vm518_vm2, %v3443_v54 }
 0x4db   : > { %v4920_v39 = vpop.f32.mrf.mxu1  ;;  %4944 = vmatmul.mubr.msk.f32.vlgmr.msra.gmra.mxu0 %vm518_vm2, %v3444_v49 }
 0x4dc   : > { %v3380_v38 = vadd.f32 %v4920_v39, %v5959_v42  ;;  %4968 = vmatpush3.msra.mxu0 %v3678_v57 }
 0x4dd   : > { %v3374_v55 = vpop.f32.mrf.mxu1  ;;  %4969 = vmatprep.subr.mxu0 %v3676_v10 }
 0x4de   : > { %v3375_v22 = vadd.f32 %v5959_v42, %v3374_v55  ;;  %v3446_v8 = vmax.f32 %v3380_v38, 0.0  ;;  %4970 = vmatpush3.msra.mxu0 %v3676_v10 }
 0x4df   : > { %4971 = vmatprep.subr.mxu0 %v3674_v18 }
 0x4e0   : > { %v3445_v53 = vmax.f32 %v3375_v22, 0.0  ;;  %4972 = vmatpush3.msra.mxu0 %v3674_v18 }
 0x4e2   : > { %4946 = vmatprep.mubr.msk.f32.mxu0 %vm518_vm2, %v3445_v53 }
 0x4e3   : > { %4947 = vmatmul.mubr.msk.f32.gmra.mxu0 %vm518_vm2, %v3446_v8 }
 0x4e5   : > { %v5984_v5 = vpop.permute.xlu0 %3459 }
 0x4e9   : > { %v3672_v23 = vpop.permute.xlu0 %3671 }
 0x4ea   : > { %4973 = vmatprep.subr.mxu0 %v3672_v23 }
 0x4eb   : > { %4974 = vmatpush3.msra.mxu0 %v3672_v23 }
 0x4ec   : > { %v4923_v21 = vpop.f32.mrf.mxu1 }
 0x4ed   : > { %v3390_v19 = vadd.f32 %v4923_v21, %v5959_v42 }
 0x4ee   : > { %v3384_v32 = vpop.f32.mrf.mxu1 }
 0x4ef   : > { %v3385_v33 = vadd.f32 %v5959_v42, %v3384_v32  ;;  %v3448_v13 = vmax.f32 %v3390_v19, 0.0 }
 0x4f1   : > { %v3447_v6 = vmax.f32 %v3385_v33, 0.0 }
 0x4f3   : > { %4949 = vmatprep.mubr.msk.f32.mxu0 %vm518_vm2, %v3447_v6 }
 0x4f4   : > { %4950 = vmatmul.mubr.msk.f32.gmra.mxu0 %vm518_vm2, %v3448_v13 }
 0x4fb   : > { %v4926_v25 = vpop.f32.mrf.mxu1 }
 0x4fc   : > { %v3400_v11 = vadd.f32 %v4926_v25, %v5959_v42 }
 0x4fd   : > { %v3394_v34 = vpop.f32.mrf.mxu1 }
 0x4fe   : > { %v3395_v59 = vadd.f32 %v5959_v42, %v3394_v34  ;;  %v3450_v63 = vmax.f32 %v3400_v11, 0.0 }
 0x500   : > { %v3449_v61 = vmax.f32 %v3395_v59, 0.0 }
 0x502   : > { %4952 = vmatprep.mubr.msk.f32.mxu0 %vm518_vm2, %v3449_v61 }
 0x503   : > { %4953 = vmatmul.mubr.msk.f32.gmra.mxu0 %vm518_vm2, %v3450_v63 }
 0x52d   : > { %v4929_v44 = vpop.f32.mrf.mxu1 }
 0x52e   : > { %v3410_v50 = vadd.f32 %v4929_v44, %v5959_v42 }
 0x52f   : > { %v3404_v58 = vpop.f32.mrf.mxu1 }
 0x530   : > { %v3405_v24 = vadd.f32 %v5959_v42, %v3404_v58  ;;  %v3452_v40 = vmax.f32 %v3410_v50, 0.0 }
 0x531   : > { %v4932_v31 = vpop.f32.mrf.mxu1 }
 0x532   : > { %v3451_v60 = vmax.f32 %v3405_v24, 0.0  ;;  %v3420_v29 = vadd.f32 %v4932_v31, %v5959_v42 }
 0x533   : > { %v3414_v9 = vpop.f32.mrf.mxu1 }
 0x534   : > { %v3415_v7 = vadd.f32 %v5959_v42, %v3414_v9  ;;  %4955 = vmatprep.mubr.msk.f32.mxu0 %vm518_vm2, %v3451_v60  ;;  %v3454_v62 = vmax.f32 %v3420_v29, 0.0 }
 0x535   : > { %v4935_v14 = vpop.f32.mrf.mxu1  ;;  %4956 = vmatmul.mubr.msk.f32.gmra.mxu0 %vm518_vm2, %v3452_v40 }
 0x536   : > { %v3453_v4 = vmax.f32 %v3415_v7, 0.0  ;;  %v3430_v30 = vadd.f32 %v4935_v14, %v5959_v42 }
 0x537   : > { %v3424_v46 = vpop.f32.mrf.mxu1 }
 0x538   : > { %v3425_v36 = vadd.f32 %v5959_v42, %v3424_v46  ;;  %4958 = vmatprep.mubr.msk.f32.mxu0 %vm518_vm2, %v3453_v4  ;;  %v3456_v48 = vmax.f32 %v3430_v30, 0.0 }
 0x539   : > { %v4938_v20 = vpop.f32.mrf.mxu1  ;;  %4959 = vmatmul.mubr.msk.f32.gmra.mxu0 %vm518_vm2, %v3454_v62 }
 0x53a   : > { %v3455_v47 = vmax.f32 %v3425_v36, 0.0  ;;  %v3440_v51 = vadd.f32 %v4938_v20, %v5959_v42 }
 0x53b   : > { %v3434_v15 = vpop.f32.mrf.mxu1 }
 0x53c   : > { %v3435_v54 = vadd.f32 %v5959_v42, %v3434_v15  ;;  %4961 = vmatprep.mubr.msk.f32.mxu0 %vm518_vm2, %v3455_v47  ;;  %v3458_v39 = vmax.f32 %v3440_v51, 0.0 }
 0x53d   : > { %4962 = vmatmul.mubr.msk.f32.gmra.mxu0 %vm518_vm2, %v3456_v48 }
 0x53e   : > { %v3457_v49 = vmax.f32 %v3435_v54, 0.0 }
 0x540   : > { %4964 = vmatprep.mubr.msk.f32.mxu0 %vm518_vm2, %v3457_v49 }
 0x541   : > { %4965 = vmatmul.mubr.msk.f32.gmra.mxu0 %vm518_vm2, %v3458_v39 }
 0x59b   : > { %v4945_v38 = vpop.f32.mrf.mxu0 }
 0x59c   : > { %v3582_v55 = vadd.f32 %v4945_v38, %v5984_v5 }
 0x59d   : > { %v3576_v22 = vpop.f32.mrf.mxu0 }
 0x59e   : > { %v3577_v53 = vadd.f32 %v3576_v22, %v5984_v5  ;;  %v3656_v21 = vadd.f32 %v3582_v55, %v5870_v27 }
 0x5a0   : > { %v3655_v8 = vadd.f32 %v3577_v53, %v5865_v52 }
 0x5a2   : > { %4975 = vmatprep.mubr.msk.f32.mxu0 %vm321_vm0, %v3655_v8 }
 0x5a3   : > { %v4948_v19 = vpop.f32.mrf.mxu0  ;;  %4976 = vmatmul.mubr.msk.f32.vlgmr.msra.gmra.mxu0 %vm321_vm0, %v3656_v21 }
 0x5a4   : > { %v3592_v42 = vadd.f32 %v4948_v19, %v5984_v5 }
 0x5a5   : > { %v3586_v32 = vpop.f32.mrf.mxu0 }
 0x5a6   : > { %v3587_v0 = vadd.f32 %v3586_v32, %v5984_v5  ;;  %v3658_v6 = vadd.f32 %v3592_v42, %v5880_v45 }
 0x5a8   : > { %v3657_v33 = vadd.f32 %v3587_v0, %v5875_v37 }
 0x5aa   : > { %4978 = vmatprep.mubr.msk.f32.mxu0 %vm321_vm0, %v3657_v33 }
 0x5ab   : > { %4979 = vmatmul.mubr.msk.f32.gmra.mxu0 %vm321_vm0, %v3658_v6 }
 0x5b4   : > { %v4951_v52 = vpop.f32.mrf.mxu0 }
 0x5b5   : > { %v3602_v27 = vadd.f32 %v4951_v52, %v5984_v5 }
 0x5b6   : > { %v3596_v13 = vpop.f32.mrf.mxu0 }
 0x5b7   : > { %v3597_v57 = vadd.f32 %v3596_v13, %v5984_v5  ;;  %v3660_v25 = vadd.f32 %v3602_v27, %v5888_v12  ;;  %v3900_v12 = vpop.permute.xlu0 %3899 }
 0x5b8   : > { %4999 = vmatprep.subr.mxu1 %v3900_v12 }
 0x5b9   : > { %v3659_v10 = vadd.f32 %v3597_v57, %v5885_v26  ;;  %v6029_v26 = vpop.permute.xlu1 %3683  ;;  %5000 = vmatpush3.msra.mxu1 %v3900_v12 }
 0x5bb   : > { %4981 = vmatprep.mubr.msk.f32.mxu0 %vm321_vm0, %v3659_v10 }
 0x5bc   : > { %4982 = vmatmul.mubr.msk.f32.gmra.mxu0 %vm321_vm0, %v3660_v25 }
 0x5bd   : > { %v3898_v63 = vpop.permute.xlu1 %3897 }
 0x5be   : > { %5001 = vmatprep.subr.mxu1 %v3898_v63 }
 0x5bf   : > { %5002 = vmatpush3.msra.mxu1 %v3898_v63 }
 0x5c3   : > { %v4954_v37 = vpop.f32.mrf.mxu0 }
 0x5c4   : > { %v3612_v45 = vadd.f32 %v4954_v37, %v5984_v5 }
 0x5c5   : > { %v3606_v11 = vpop.f32.mrf.mxu0 }
 0x5c6   : > { %v3607_v34 = vadd.f32 %v3606_v11, %v5984_v5  ;;  %v3662_v61 = vadd.f32 %v3612_v45, %v5900_v1 }
 0x5c8   : > { %v3661_v59 = vadd.f32 %v3607_v34, %v5893_v17 }
 0x5ca   : > { %4984 = vmatprep.mubr.msk.f32.mxu0 %vm321_vm0, %v3661_v59 }
 0x5cb   : > { %4985 = vmatmul.mubr.msk.f32.gmra.mxu0 %vm321_vm0, %v3662_v61 }
 0x5f5   : > { %v4957_v18 = vpop.f32.mrf.mxu0 }
 0x5f6   : > { %v3622_v23 = vadd.f32 %v4957_v18, %v5984_v5 }
 0x5f7   : > { %v3616_v44 = vpop.f32.mrf.mxu0 }
 0x5f8   : > { %v3617_v17 = vadd.f32 %v3616_v44, %v5984_v5  ;;  %v3664_v58 = vadd.f32 %v3622_v23, %v5918_v16 }
 0x5f9   : > { %v4960_v50 = vpop.f32.mrf.mxu0 }
 0x5fa   : > { %v3663_v1 = vadd.f32 %v3617_v17, %v5915_v28  ;;  %v3632_v24 = vadd.f32 %v4960_v50, %v5984_v5 }
 0x5fb   : > { %v3626_v31 = vpop.f32.mrf.mxu0 }
 0x5fc   : > { %v3627_v60 = vadd.f32 %v3626_v31, %v5984_v5  ;;  %4987 = vmatprep.mubr.msk.f32.mxu0 %vm321_vm0, %v3663_v1  ;;  %v3666_v9 = vadd.f32 %v3632_v24, %v5928_v43 }
 0x5fd   : > { %v4963_v40 = vpop.f32.mrf.mxu0  ;;  %4988 = vmatmul.mubr.msk.f32.gmra.mxu0 %vm321_vm0, %v3664_v58 }
 0x5fe   : > { %v3665_v29 = vadd.f32 %v3627_v60, %v5925_v2  ;;  %v3642_v7 = vadd.f32 %v4963_v40, %v5984_v5  ;;  %v3904_v60 = vpop.permute.xlu0 %3903 }
 0x5ff   : > { %v3636_v14 = vpop.f32.mrf.mxu0 }
 0x600   : > { %v3637_v28 = vadd.f32 %v3636_v14, %v5984_v5  ;;  %4990 = vmatprep.mubr.msk.f32.mxu0 %vm321_vm0, %v3665_v29  ;;  %v3668_v62 = vadd.f32 %v3642_v7, %v5938_v56 }
 0x601   : > { %v4966_v16 = vpop.f32.mrf.mxu0  ;;  %4991 = vmatmul.mubr.msk.f32.gmra.mxu0 %vm321_vm0, %v3666_v9 }
 0x602   : > { %v3667_v4 = vadd.f32 %v3637_v28, %v5935_v35  ;;  %v3652_v30 = vadd.f32 %v4966_v16, %v5984_v5 }
 0x603   : > { %v3646_v46 = vpop.f32.mrf.mxu0 }
 0x604   : > { %v3647_v2 = vadd.f32 %v3646_v46, %v5984_v5  ;;  %4993 = vmatprep.mubr.msk.f32.mxu0 %vm321_vm0, %v3667_v4  ;;  %v3670_v36 = vadd.f32 %v3652_v30, %v5948_v3 }
 0x605   : > { %4994 = vmatmul.mubr.msk.f32.gmra.mxu0 %vm321_vm0, %v3668_v62 }
 0x606   : > { %v3669_v43 = vadd.f32 %v3647_v2, %v5945_v41 }
 0x608   : > { %4996 = vmatprep.mubr.msk.f32.mxu0 %vm321_vm0, %v3669_v43 }
 0x609   : > { %4997 = vmatmul.mubr.msk.f32.gmra.mxu0 %vm321_vm0, %v3670_v36 }
 0x663   : > { %v4977_v35 = vpop.f32.mrf.mxu0 }
 0x664   : > { %v3806_v56 = vadd.f32 %v4977_v35, %v6029_v26 }
 0x665   : > { %v3800_v20 = vpop.f32.mrf.mxu0 }
 0x666   : > { %v3801_v47 = vadd.f32 %v3800_v20, %v6029_v26  ;;  %v3880_v5 = vmax.f32 %v3806_v56, 0.0 }
 0x668   : > { %v3879_v48 = vmax.f32 %v3801_v47, 0.0 }
 0x66a   : > { %5003 = vmatprep.mubr.msk.f32.mxu1 %vm518_vm2, %v3879_v48 }
 0x66b   : > { %v4980_v51 = vpop.f32.mrf.mxu0  ;;  %5004 = vmatmul.mubr.msk.f32.vlgmr.msra.gmra.mxu1 %vm518_vm2, %v3880_v5 }
 0x66c   : > { %v3816_v41 = vadd.f32 %v4980_v51, %v6029_v26 }
 0x66d   : > { %v3810_v3 = vpop.f32.mrf.mxu0 }
 0x66e   : > { %v3811_v15 = vadd.f32 %v3810_v3, %v6029_v26  ;;  %v3882_v49 = vmax.f32 %v3816_v41, 0.0 }
 0x670   : > { %v3881_v54 = vmax.f32 %v3811_v15, 0.0 }
 0x672   : > { %5006 = vmatprep.mubr.msk.f32.mxu1 %vm518_vm2, %v3881_v54 }
 0x673   : > { %5007 = vmatmul.mubr.msk.f32.gmra.mxu1 %vm518_vm2, %v3882_v49 }
 0x67c   : > { %v4983_v39 = vpop.f32.mrf.mxu0 }
 0x67d   : > { %v3826_v38 = vadd.f32 %v4983_v39, %v6029_v26 }
 0x67e   : > { %v3820_v55 = vpop.f32.mrf.mxu0 }
 0x67f   : > { %v3821_v22 = vadd.f32 %v3820_v55, %v6029_v26  ;;  %v3884_v8 = vmax.f32 %v3826_v38, 0.0 }
 0x681   : > { %v3883_v53 = vmax.f32 %v3821_v22, 0.0 }
 0x683   : > { %5009 = vmatprep.mubr.msk.f32.mxu1 %vm518_vm2, %v3883_v53 }
 0x684   : > { %5010 = vmatmul.mubr.msk.f32.gmra.mxu1 %vm518_vm2, %v3884_v8 }
 0x68b   : > { %v4986_v21 = vpop.f32.mrf.mxu0 }
 0x68c   : > { %v3836_v19 = vadd.f32 %v4986_v21, %v6029_v26 }
 0x68d   : > { %v3830_v42 = vpop.f32.mrf.mxu0 }
 0x68e   : > { %v3831_v32 = vadd.f32 %v3830_v42, %v6029_v26  ;;  %v3886_v33 = vmax.f32 %v3836_v19, 0.0 }
 0x690   : > { %v3885_v0 = vmax.f32 %v3831_v32, 0.0 }
 0x692   : > { %5012 = vmatprep.mubr.msk.f32.mxu1 %vm518_vm2, %v3885_v0 }
 0x693   : > { %5013 = vmatmul.mubr.msk.f32.gmra.mxu1 %vm518_vm2, %v3886_v33 }
 0x6bd   : > { %v4989_v6 = vpop.f32.mrf.mxu0 }
 0x6be   : > { %v3846_v52 = vadd.f32 %v4989_v6, %v6029_v26 }
 0x6bf   : > { %v3840_v27 = vpop.f32.mrf.mxu0 }
 0x6c0   : > { %v3841_v13 = vadd.f32 %v3840_v27, %v6029_v26  ;;  %v3888_v25 = vmax.f32 %v3846_v52, 0.0 }
 0x6c1   : > { %v4992_v57 = vpop.f32.mrf.mxu0 }
 0x6c2   : > { %v3887_v10 = vmax.f32 %v3841_v13, 0.0  ;;  %v3856_v37 = vadd.f32 %v4992_v57, %v6029_v26 }
 0x6c3   : > { %v3850_v45 = vpop.f32.mrf.mxu0 }
 0x6c4   : > { %v3851_v11 = vadd.f32 %v3850_v45, %v6029_v26  ;;  %5015 = vmatprep.mubr.msk.f32.mxu1 %vm518_vm2, %v3887_v10  ;;  %v3890_v61 = vmax.f32 %v3856_v37, 0.0 }
 0x6c5   : > { %v4995_v34 = vpop.f32.mrf.mxu0  ;;  %5016 = vmatmul.mubr.msk.f32.gmra.mxu1 %vm518_vm2, %v3888_v25 }
 0x6c6   : > { %v3889_v59 = vmax.f32 %v3851_v11, 0.0  ;;  %v3866_v12 = vadd.f32 %v4995_v34, %v6029_v26 }
 0x6c7   : > { %v3860_v63 = vpop.f32.mrf.mxu0 }
 0x6c8   : > { %v3861_v18 = vadd.f32 %v3860_v63, %v6029_v26  ;;  %5018 = vmatprep.mubr.msk.f32.mxu1 %vm518_vm2, %v3889_v59  ;;  %v3892_v17 = vmax.f32 %v3866_v12, 0.0 }
 0x6c9   : > { %v4998_v23 = vpop.f32.mrf.mxu0  ;;  %5019 = vmatmul.mubr.msk.f32.gmra.mxu1 %vm518_vm2, %v3890_v61 }
 0x6ca   : > { %v3891_v44 = vmax.f32 %v3861_v18, 0.0  ;;  %v3876_v50 = vadd.f32 %v4998_v23, %v6029_v26 }
 0x6cb   : > { %v3870_v1 = vpop.f32.mrf.mxu0 }
 0x6cc   : > { %v3871_v58 = vadd.f32 %v3870_v1, %v6029_v26  ;;  %5021 = vmatprep.mubr.msk.f32.mxu1 %vm518_vm2, %v3891_v44  ;;  %v3894_v31 = vmax.f32 %v3876_v50, 0.0 }
 0x6cd   : > { %5022 = vmatmul.mubr.msk.f32.gmra.mxu1 %vm518_vm2, %v3892_v17 }
 0x6ce   : > { %v3893_v24 = vmax.f32 %v3871_v58, 0.0 }
 0x6d0   : > { %5024 = vmatprep.mubr.msk.f32.mxu1 %vm518_vm2, %v3893_v24 }
 0x6d1   : > { %5025 = vmatmul.mubr.msk.f32.gmra.mxu1 %vm518_vm2, %v3894_v31 }
 0x72b   : > { %v5005_v40 = vpop.f32.mrf.mxu1 }
 0x72c   : > { %v6087_v29 = vadd.f32 %v5005_v40, %v3904_v60 }
 0x72d   : > { %v4020_v9 = vpop.f32.mrf.mxu1 }
 0x72e   : > { %v6089_v7 = vadd.f32 %v4020_v9, %v3904_v60  ;;  %v4102_v26 = vsel %vm1748_vm3, %v6087_v29, -inf }
 0x72f   : > { %4103 = vmax.xlane.f32.xlu0 %v4102_v26 }
 0x730   : > { %v4099_v14 = vsel %vm1748_vm3, %v6089_v7, -inf }
 0x731   : > { %4100 = vmax.xlane.f32.xlu1 %v4099_v14 }
 0x733   : > { %v5008_v28 = vpop.f32.mrf.mxu1 }
 0x734   : > { %v6095_v16 = vadd.f32 %v5008_v28, %v3904_v60 }
 0x735   : > { %v4030_v4 = vpop.f32.mrf.mxu1 }
 0x736   : > { %v6097_v62 = vadd.f32 %v4030_v4, %v3904_v60  ;;  %v4108_v30 = vsel %vm1748_vm3, %v6095_v16, -inf }
 0x737   : > { %4109 = vmax.xlane.f32.xlu1 %v4108_v30 }
 0x738   : > { %v4105_v46 = vsel %vm1748_vm3, %v6097_v62, -inf }
 0x739   : > { %4106 = vmax.xlane.f32.xlu0 %v4105_v46 }
 0x744   : > { %v5011_v2 = vpop.f32.mrf.mxu1 }
 0x745   : > { %v6103_v43 = vadd.f32 %v5011_v2, %v3904_v60 }
 0x746   : > { %v4040_v36 = vpop.f32.mrf.mxu1 }
 0x747   : > { %v6105_v35 = vadd.f32 %v4040_v36, %v3904_v60  ;;  %v4114_v56 = vsel %vm1748_vm3, %v6103_v43, -inf }
 0x748   : > { %4115 = vmax.xlane.f32.xlu1 %v4114_v56 }
 0x749   : > { %v4111_v20 = vsel %vm1748_vm3, %v6105_v35, -inf }
 0x74a   : > { %4112 = vmax.xlane.f32.xlu0 %v4111_v20 }
 0x753   : > { %v5014_v47 = vpop.f32.mrf.mxu1 }
 0x754   : > { %v6111_v48 = vadd.f32 %v5014_v47, %v3904_v60 }
 0x755   : > { %v4050_v5 = vpop.f32.mrf.mxu1 }
 0x756   : > { %v6113_v51 = vadd.f32 %v4050_v5, %v3904_v60  ;;  %v4120_v41 = vsel %vm1748_vm3, %v6111_v48, -inf }
 0x757   : > { %4121 = vmax.xlane.f32.xlu1 %v4120_v41 }
 0x758   : > { %v4117_v3 = vsel %vm1748_vm3, %v6113_v51, -inf }
 0x759   : > { %4118 = vmax.xlane.f32.xlu0 %v4117_v3 }
 0x785   : > { %v5017_v15 = vpop.f32.mrf.mxu1 }
 0x786   : > { %v6119_v54 = vadd.f32 %v5017_v15, %v3904_v60 }
 0x787   : > { %v4060_v49 = vpop.f32.mrf.mxu1 }
 0x788   : > { %v6121_v39 = vadd.f32 %v4060_v49, %v3904_v60  ;;  %v4126_v38 = vsel %vm1748_vm3, %v6119_v54, -inf }
 0x789   : > { %v5020_v55 = vpop.f32.mrf.mxu1  ;;  %4127 = vmax.xlane.f32.xlu1 %v4126_v38 }
 0x78a   : > { %v6125_v22 = vadd.f32 %v5020_v55, %v3904_v60  ;;  %v4123_v53 = vsel %vm1748_vm3, %v6121_v39, -inf }
 0x78b   : > { %v4070_v8 = vpop.f32.mrf.mxu1  ;;  %4124 = vmax.xlane.f32.xlu0 %v4123_v53 }
 0x78c   : > { %v6129_v21 = vadd.f32 %v4070_v8, %v3904_v60  ;;  %v4132_v19 = vsel %vm1748_vm3, %v6125_v22, -inf }
 0x78d   : > { %v5023_v42 = vpop.f32.mrf.mxu1  ;;  %4133 = vmax.xlane.f32.xlu1 %v4132_v19 }
 0x78e   : > { %v6133_v32 = vadd.f32 %v5023_v42, %v3904_v60  ;;  %v4129_v0 = vsel %vm1748_vm3, %v6129_v21, -inf }
 0x78f   : > { %v4080_v33 = vpop.f32.mrf.mxu1  ;;  %4130 = vmax.xlane.f32.xlu0 %v4129_v0 }
 0x790   : > { %v6137_v6 = vadd.f32 %v4080_v33, %v3904_v60  ;;  %v4138_v52 = vsel %vm1748_vm3, %v6133_v32, -inf }
 0x791   : > { %v5026_v27 = vpop.f32.mrf.mxu1  ;;  %4139 = vmax.xlane.f32.xlu1 %v4138_v52 }
 0x792   : > { %v6141_v13 = vadd.f32 %v5026_v27, %v3904_v60  ;;  %v4135_v57 = vsel %vm1748_vm3, %v6137_v6, -inf }
 0x793   : > { %v4090_v10 = vpop.f32.mrf.mxu1  ;;  %4136 = vmax.xlane.f32.xlu0 %v4135_v57 }
 0x794   : > { %v6145_v25 = vadd.f32 %v4090_v10, %v3904_v60  ;;  %v4144_v37 = vsel %vm1748_vm3, %v6141_v13, -inf }
 0x795   : > { %4145 = vmax.xlane.f32.xlu1 %v4144_v37 }
 0x796   : > { %v4141_v45 = vsel %vm1748_vm3, %v6145_v25, -inf }
 0x797   : > { %4142 = vmax.xlane.f32.xlu0 %v4141_v45 }
 0x7b8   : > { %v6151_v11 = vpop.xlane.xlu0 %4103 }
 0x7b9   : > { %v4148_v34 = vsub.f32 %v6087_v29, %v6151_v11 }
 0x7ba   : > { %v6155_v59 = vpop.xlane.xlu1 %4100 }
 0x7bb   : > { %v4165_v61 = vmul.f32 1.442695, %v4148_v34  ;;  %v4147_v12 = vsub.f32 %v6089_v7, %v6155_v59 }
 0x7bd   : > { %5106 = vpow2.f32 %v4165_v61  ;;  %v4163_v63 = vmul.f32 1.442695, %v4147_v12 }
 0x7bf   : > { %5108 = vpow2.f32 %v4163_v63 }
 0x7c0   : > { %v6159_v18 = vpop.xlane.xlu1 %4109 }
 0x7c1   : > { %v4150_v23 = vsub.f32 %v6095_v16, %v6159_v18 }
 0x7c2   : > { %v6163_v44 = vpop.xlane.xlu0 %4106 }
 0x7c3   : > { %v4169_v17 = vmul.f32 1.442695, %v4150_v23  ;;  %v4149_v50 = vsub.f32 %v6097_v62, %v6163_v44 }
 0x7c5   : > { %5110 = vpow2.f32 %v4169_v17  ;;  %v4167_v1 = vmul.f32 1.442695, %v4149_v50 }
 0x7c7   : > { %5112 = vpow2.f32 %v4167_v1 }
 0x7ca   : > { %v5107_v58 = vpop.eup %5106 }
 0x7cb   : > { %v4198_v24 = vsel %vm1748_vm3, %v5107_v58, 0.0 }
 0x7cc   : > { %v5109_v31 = vpop.eup %5108  ;;  %4199 = vadd.xlane.f32.xlu1 %v4198_v24 }
 0x7cd   : > { %v4195_v60 = vsel %vm1748_vm3, %v5109_v31, 0.0 }
 0x7ce   : > { %4196 = vadd.xlane.f32.xlu0 %v4195_v60 }
 0x7d1   : > { %v6169_v40 = vpop.xlane.xlu1 %4115 }
 0x7d2   : > { %v5111_v9 = vpop.eup %5110  ;;  %v4152_v26 = vsub.f32 %v6103_v43, %v6169_v40 }
 0x7d3   : > { %v6173_v14 = vpop.xlane.xlu0 %4112  ;;  %v4204_v28 = vsel %vm1748_vm3, %v5111_v9, 0.0 }
 0x7d4   : > { %v5113_v4 = vpop.eup %5112  ;;  %v4173_v30 = vmul.f32 1.442695, %v4152_v26  ;;  %v4151_v46 = vsub.f32 %v6105_v35, %v6173_v14  ;;  %4205 = vadd.xlane.f32.xlu1 %v4204_v28 }
 0x7d5   : > { %v4201_v2 = vsel %vm1748_vm3, %v5113_v4, 0.0 }
 0x7d6   : > { %5114 = vpow2.f32 %v4173_v30  ;;  %v4171_v36 = vmul.f32 1.442695, %v4151_v46  ;;  %4202 = vadd.xlane.f32.xlu0 %v4201_v2 }
 0x7d8   : > { %5116 = vpow2.f32 %v4171_v36 }
 0x7e0   : > { %v6179_v56 = vpop.xlane.xlu1 %4121 }
 0x7e1   : > { %v4154_v20 = vsub.f32 %v6111_v48, %v6179_v56 }
 0x7e2   : > { %v6183_v47 = vpop.xlane.xlu0 %4118 }
 0x7e3   : > { %v5115_v5 = vpop.eup %5114  ;;  %v4177_v41 = vmul.f32 1.442695, %v4154_v20  ;;  %v4153_v3 = vsub.f32 %v6113_v51, %v6183_v47 }
 0x7e4   : > { %v4210_v15 = vsel %vm1748_vm3, %v5115_v5, 0.0 }
 0x7e5   : > { %v5117_v49 = vpop.eup %5116  ;;  %5118 = vpow2.f32 %v4177_v41  ;;  %v4175_v38 = vmul.f32 1.442695, %v4153_v3  ;;  %4211 = vadd.xlane.f32.xlu1 %v4210_v15 }
 0x7e6   : > { %v4207_v55 = vsel %vm1748_vm3, %v5117_v49, 0.0 }
 0x7e7   : > { %5120 = vpow2.f32 %v4175_v38  ;;  %4208 = vadd.xlane.f32.xlu0 %v4207_v55 }
 0x7f2   : > { %v5119_v53 = vpop.eup %5118 }
 0x7f3   : > { %v4216_v8 = vsel %vm1748_vm3, %v5119_v53, 0.0 }
 0x7f4   : > { %v5121_v19 = vpop.eup %5120  ;;  %4217 = vadd.xlane.f32.xlu1 %v4216_v8 }
 0x7f5   : > { %v4213_v42 = vsel %vm1748_vm3, %v5121_v19, 0.0 }
 0x7f6   : > { %4214 = vadd.xlane.f32.xlu0 %v4213_v42 }
 0x812   : > { %v6191_v0 = vpop.xlane.xlu1 %4127 }
 0x813   : > { %v4156_v33 = vsub.f32 %v6119_v54, %v6191_v0 }
 0x814   : > { %v6195_v52 = vpop.xlane.xlu0 %4124 }
 0x815   : > { %v4181_v27 = vmul.f32 1.442695, %v4156_v33  ;;  %v4155_v57 = vsub.f32 %v6121_v39, %v6195_v52 }
 0x816   : > { %v6199_v10 = vpop.xlane.xlu1 %4133 }
 0x817   : > { %5122 = vpow2.f32 %v4181_v27  ;;  %v4179_v37 = vmul.f32 1.442695, %v4155_v57  ;;  %v4158_v45 = vsub.f32 %v6125_v22, %v6199_v10 }
 0x818   : > { %v6203_v34 = vpop.xlane.xlu0 %4130 }
 0x819   : > { %5124 = vpow2.f32 %v4179_v37  ;;  %v4185_v61 = vmul.f32 1.442695, %v4158_v45  ;;  %v4157_v12 = vsub.f32 %v6129_v21, %v6203_v34 }
 0x81a   : > { %v6207_v63 = vpop.xlane.xlu1 %4139 }
 0x81b   : > { %5126 = vpow2.f32 %v4185_v61  ;;  %v4183_v23 = vmul.f32 1.442695, %v4157_v12  ;;  %v4160_v17 = vsub.f32 %v6133_v32, %v6207_v63 }
 0x81c   : > { %v6211_v50 = vpop.xlane.xlu0 %4136 }
 0x81d   : > { %5128 = vpow2.f32 %v4183_v23  ;;  %v4189_v1 = vmul.f32 1.442695, %v4160_v17  ;;  %v4159_v58 = vsub.f32 %v6137_v6, %v6211_v50 }
 0x81e   : > { %v6215_v24 = vpop.xlane.xlu1 %4145 }
 0x81f   : > { %5130 = vpow2.f32 %v4189_v1  ;;  %v4187_v31 = vmul.f32 1.442695, %v4159_v58  ;;  %v4162_v60 = vsub.f32 %v6141_v13, %v6215_v24 }
 0x820   : > { %v6219_v9 = vpop.xlane.xlu0 %4142 }
 0x821   : > { %5132 = vpow2.f32 %v4187_v31  ;;  %v4193_v26 = vmul.f32 1.442695, %v4162_v60  ;;  %v4161_v28 = vsub.f32 %v6145_v25, %v6219_v9 }
 0x823   : > { %5134 = vpow2.f32 %v4193_v26  ;;  %v4191_v4 = vmul.f32 1.442695, %v4161_v28 }
 0x824   : > { %v5123_v30 = vpop.eup %5122 }
 0x825   : > { %5136 = vpow2.f32 %v4191_v4  ;;  %v4222_v46 = vsel %vm1748_vm3, %v5123_v30, 0.0 }
 0x826   : > { %v5125_v2 = vpop.eup %5124  ;;  %4223 = vadd.xlane.f32.xlu1 %v4222_v46 }
 0x827   : > { %v4219_v36 = vsel %vm1748_vm3, %v5125_v2, 0.0 }
 0x828   : > { %v5127_v20 = vpop.eup %5126  ;;  %4220 = vadd.xlane.f32.xlu0 %v4219_v36 }
 0x829   : > { %v4228_v5 = vsel %vm1748_vm3, %v5127_v20, 0.0 }
 0x82a   : > { %v5129_v41 = vpop.eup %5128  ;;  %4229 = vadd.xlane.f32.xlu1 %v4228_v5 }
 0x82b   : > { %v4225_v3 = vsel %vm1748_vm3, %v5129_v41, 0.0 }
 0x82c   : > { %v5131_v15 = vpop.eup %5130  ;;  %4226 = vadd.xlane.f32.xlu0 %v4225_v3 }
 0x82d   : > { %v4234_v49 = vsel %vm1748_vm3, %v5131_v15, 0.0 }
 0x82e   : > { %v5133_v38 = vpop.eup %5132  ;;  %4235 = vadd.xlane.f32.xlu1 %v4234_v49 }
 0x82f   : > { %v4231_v55 = vsel %vm1748_vm3, %v5133_v38, 0.0 }
 0x830   : > { %v5135_v53 = vpop.eup %5134  ;;  %4232 = vadd.xlane.f32.xlu0 %v4231_v55 }
 0x831   : > { %v4240_v8 = vsel %vm1748_vm3, %v5135_v53, 0.0 }
 0x832   : > { %v5137_v19 = vpop.eup %5136  ;;  %4241 = vadd.xlane.f32.xlu1 %v4240_v8 }
 0x833   : > { %v4237_v42 = vsel %vm1748_vm3, %v5137_v19, 0.0 }
 0x834   : > { %4238 = vadd.xlane.f32.xlu0 %v4237_v42 }
 0x855   : > { %v4200_v33 = vpop.xlane.xlu1 %4199 }
 0x856   : > { %5138 = vlog2.f32 %v4200_v33 }
 0x857   : > { %v4197_v27 = vpop.xlane.xlu0 %4196 }
 0x858   : > { %5140 = vlog2.f32 %v4197_v27 }
 0x85d   : > { %v4206_v57 = vpop.xlane.xlu1 %4205 }
 0x85e   : > { %5142 = vlog2.f32 %v4206_v57 }
 0x85f   : > { %v4203_v37 = vpop.xlane.xlu0 %4202 }
 0x860   : > { %5144 = vlog2.f32 %v4203_v37 }
 0x863   : > { %v5139_v45 = vpop.eup %5138 }
 0x864   : > { %v4246_v61 = vmul.f32 0.6931472, %v5139_v45 }
 0x865   : > { %v5141_v12 = vpop.eup %5140 }
 0x866   : > { %v4276_v23 = vadd.f32 %v4246_v61, %v6151_v11  ;;  %v4244_v17 = vmul.f32 0.6931472, %v5141_v12 }
 0x868   : > { %v4292_v1 = vsub.f32 %v6087_v29, %v4276_v23  ;;  %v4275_v58 = vadd.f32 %v4244_v17, %v6155_v59 }
 0x86a   : > { %4308 = vst.msk [vmem:[%s6236_s25 + $0x8] sm:$0xff] %vm1748_vm3, %v4292_v1  ;;  %v4291_v31 = vsub.f32 %v6089_v7, %v4275_v58 }
 0x86b   : > { %v5143_v60 = vpop.eup %5142 }
 0x86c   : > { %4307 = vst.msk [vmem:[%s6236_s25] sm:$0xff] %vm1748_vm3, %v4291_v31  ;;  %v4250_v11 = vmul.f32 0.6931472, %v5143_v60 }
 0x86d   : > { %v5145_v26 = vpop.eup %5144 }
 0x86e   : > { %v4278_v28 = vadd.f32 %v4250_v11, %v6159_v18  ;;  %v4248_v4 = vmul.f32 0.6931472, %v5145_v26  ;;  %v4212_v30 = vpop.xlane.xlu1 %4211 }
 0x86f   : > { %5146 = vlog2.f32 %v4212_v30 }
 0x870   : > { %v4294_v29 = vsub.f32 %v6095_v16, %v4278_v28  ;;  %v4277_v46 = vadd.f32 %v4248_v4, %v6163_v44  ;;  %v4209_v59 = vpop.xlane.xlu0 %4208 }
 0x871   : > { %5148 = vlog2.f32 %v4209_v59 }
 0x872   : > { %4310 = vst.msk [vmem:[%s6236_s25 + $0x18] sm:$0xff] %vm1748_vm3, %v4294_v29  ;;  %v4293_v7 = vsub.f32 %v6097_v62, %v4277_v46 }
 0x874   : > { %4309 = vst.msk [vmem:[%s6236_s25 + $0x10] sm:$0xff] %vm1748_vm3, %v4293_v7 }
 0x87c   : > { %v5147_v2 = vpop.eup %5146 }
 0x87d   : > { %v4254_v36 = vmul.f32 0.6931472, %v5147_v2  ;;  %v4218_v18 = vpop.xlane.xlu1 %4217 }
 0x87e   : > { %v5149_v20 = vpop.eup %5148  ;;  %5150 = vlog2.f32 %v4218_v18 }
 0x87f   : > { %v4280_v5 = vadd.f32 %v4254_v36, %v6169_v40  ;;  %v4252_v16 = vmul.f32 0.6931472, %v5149_v20  ;;  %v4215_v44 = vpop.xlane.xlu0 %4214 }
 0x880   : > { %5152 = vlog2.f32 %v4215_v44 }
 0x881   : > { %v4296_v41 = vsub.f32 %v6103_v43, %v4280_v5  ;;  %v4279_v3 = vadd.f32 %v4252_v16, %v6173_v14 }
 0x883   : > { %4312 = vst.msk [vmem:[%s6236_s25 + $0x28] sm:$0xff] %vm1748_vm3, %v4296_v41  ;;  %v4295_v62 = vsub.f32 %v6105_v35, %v4279_v3 }
 0x885   : > { %4311 = vst.msk [vmem:[%s6236_s25 + $0x20] sm:$0xff] %vm1748_vm3, %v4295_v62 }
 0x88b   : > { %v5151_v15 = vpop.eup %5150 }
 0x88c   : > { %v4258_v49 = vmul.f32 0.6931472, %v5151_v15 }
 0x88d   : > { %v5153_v38 = vpop.eup %5152 }
 0x88e   : > { %v4282_v40 = vadd.f32 %v4258_v49, %v6179_v56  ;;  %v4256_v55 = vmul.f32 0.6931472, %v5153_v38 }
 0x890   : > { %v4298_v53 = vsub.f32 %v6111_v48, %v4282_v40  ;;  %v4281_v8 = vadd.f32 %v4256_v55, %v6183_v47 }
 0x892   : > { %4314 = vst.msk [vmem:[%s6236_s25 + $0x38] sm:$0xff] %vm1748_vm3, %v4298_v53  ;;  %v4297_v43 = vsub.f32 %v6113_v51, %v4281_v8 }
 0x894   : > { %4313 = vst.msk [vmem:[%s6236_s25 + $0x30] sm:$0xff] %vm1748_vm3, %v4297_v43 }
 0x8af   : > { %v4224_v14 = vpop.xlane.xlu1 %4223 }
 0x8b0   : > { %5154 = vlog2.f32 %v4224_v14 }
 0x8b1   : > { %v4221_v35 = vpop.xlane.xlu0 %4220 }
 0x8b2   : > { %5156 = vlog2.f32 %v4221_v35 }
 0x8b3   : > { %v4230_v19 = vpop.xlane.xlu1 %4229 }
 0x8b4   : > { %5158 = vlog2.f32 %v4230_v19 }
 0x8b5   : > { %v4227_v42 = vpop.xlane.xlu0 %4226 }
 0x8b6   : > { %5160 = vlog2.f32 %v4227_v42 }
 0x8b7   : > { %v4236_v56 = vpop.xlane.xlu1 %4235 }
 0x8b8   : > { %5162 = vlog2.f32 %v4236_v56 }
 0x8b9   : > { %v4233_v33 = vpop.xlane.xlu0 %4232 }
 0x8ba   : > { %5164 = vlog2.f32 %v4233_v33 }
 0x8bb   : > { %v4242_v48 = vpop.xlane.xlu1 %4241 }
 0x8bc   : > { %5166 = vlog2.f32 %v4242_v48 }
 0x8bd   : > { %v5155_v47 = vpop.eup %5154  ;;  %v4239_v27 = vpop.xlane.xlu0 %4238 }
 0x8be   : > { %v4262_v51 = vmul.f32 0.6931472, %v5155_v47  ;;  %5168 = vlog2.f32 %v4239_v27 }
 0x8bf   : > { %v5157_v57 = vpop.eup %5156 }
 0x8c0   : > { %v4284_v37 = vadd.f32 %v4262_v51, %v6191_v0  ;;  %v4260_v45 = vmul.f32 0.6931472, %v5157_v57 }
 0x8c1   : > { %v5159_v61 = vpop.eup %5158 }
 0x8c2   : > { %v4300_v12 = vsub.f32 %v6119_v54, %v4284_v37  ;;  %v4283_v23 = vadd.f32 %v4260_v45, %v6195_v52  ;;  %v4266_v17 = vmul.f32 0.6931472, %v5159_v61 }
 0x8c3   : > { %v5161_v1 = vpop.eup %5160 }
 0x8c4   : > { %4316 = vst.msk [vmem:[%s6236_s25 + $0x48] sm:$0xff] %vm1748_vm3, %v4300_v12  ;;  %v4299_v58 = vsub.f32 %v6121_v39, %v4283_v23  ;;  %v4286_v31 = vadd.f32 %v4266_v17, %v6199_v10  ;;  %v4264_v60 = vmul.f32 0.6931472, %v5161_v1 }
 0x8c5   : > { %v5163_v11 = vpop.eup %5162 }
 0x8c6   : > { %4315 = vst.msk [vmem:[%s6236_s25 + $0x40] sm:$0xff] %vm1748_vm3, %v4299_v58  ;;  %v4302_v0 = vsub.f32 %v6125_v22, %v4286_v31  ;;  %v4285_v54 = vadd.f32 %v4264_v60, %v6203_v34  ;;  %v4270_v26 = vmul.f32 0.6931472, %v5163_v11 }
 0x8c7   : > { %v5165_v52 = vpop.eup %5164 }
 0x8c8   : > { %4318 = vst.msk [vmem:[%s6236_s25 + $0x58] sm:$0xff] %vm1748_vm3, %v4302_v0  ;;  %v4301_v28 = vsub.f32 %v6129_v21, %v4285_v54  ;;  %v4288_v39 = vadd.f32 %v4270_v26, %v6207_v63  ;;  %v4268_v10 = vmul.f32 0.6931472, %v5165_v52 }
 0x8c9   : > { %v5167_v4 = vpop.eup %5166 }
 0x8ca   : > { %4317 = vst.msk [vmem:[%s6236_s25 + $0x50] sm:$0xff] %vm1748_vm3, %v4301_v28  ;;  %v4304_v30 = vsub.f32 %v6133_v32, %v4288_v39  ;;  %v4287_v22 = vadd.f32 %v4268_v10, %v6211_v50  ;;  %v4274_v34 = vmul.f32 0.6931472, %v5167_v4 }
 0x8cb   : > { %v5169_v29 = vpop.eup %5168 }
 0x8cc   : > { %4320 = vst.msk [vmem:[%s6236_s25 + $0x68] sm:$0xff] %vm1748_vm3, %v4304_v30  ;;  %v4303_v46 = vsub.f32 %v6137_v6, %v4287_v22  ;;  %v4290_v21 = vadd.f32 %v4274_v34, %v6215_v24  ;;  %v4272_v59 = vmul.f32 0.6931472, %v5169_v29 }
 0x8ce   : > { %4319 = vst.msk [vmem:[%s6236_s25 + $0x60] sm:$0xff] %vm1748_vm3, %v4303_v46  ;;  %v4306_v63 = vsub.f32 %v6141_v13, %v4290_v21  ;;  %v4289_v7 = vadd.f32 %v4272_v59, %v6219_v9 }
 0x8d0   : > { %4322 = vst.msk [vmem:[%s6236_s25 + $0x78] sm:$0xff] %vm1748_vm3, %v4306_v63  ;;  %v4305_v32 = vsub.f32 %v6145_v25, %v4289_v7 }
 0x8d2   : > { %4321 = vst.msk [vmem:[%s6236_s25 + $0x70] sm:$0xff] %vm1748_vm3, %v4305_v32 }
 0x8d3 PF: > { %s17_s21 = sadd.s32 1, %s5176_s21  }
 0x8d4   : > { %p14_p4 = scmp.ge.s32.totalorder %s17_s21, 4  }
 0x8d6   :  { %16 = sbr.rel (!%p14_p4) target bundleno = 1 (0x1), region = 82 }

</bundles_post_ra>
